<compile_context>
chip_gen: v5e
topology: v5e:2x2
jax: 0.10.0
libtpu: 0.0.40
codegen_flags: <defaults>
</compile_context>

<pallas_src>
import functools
import math

import jax
import jax.numpy as jnp
from jax.experimental import pallas as pl
from jax.experimental.pallas import tpu as pltpu

_EPS = 1e-20


def _band_matrix(n, w, dtype=jnp.float32):
    """M[r, i] = 1 if r+1-w <= i <= r+w else 0.

    (M @ img) reproduces the row-sum of the 2w-wide integral-image box filter applied to
    the zero-padded image: the zero padding is absorbed by clipping the band at the edges.
    """
    r = jnp.arange(n)[:, None]
    i = jnp.arange(n)[None, :]
    return ((i >= r + 1 - w) & (i <= r + w)).astype(dtype)


def _d_rho_kernel(br_ref, bct_ref, op_ref, lab_ref, out_ref, *, w, n_chan, n_lab):
    # br_ref : (H, H)        row band matrix
    # bct_ref: (W, W)        column band matrix, already transposed
    # op_ref : (1, C, H, W)  output bands for this batch
    # lab_ref: (1, L, H, W)  label bands for this batch
    # out_ref: (1, C, 1, 1)  per-(batch, channel) spatial mean of X = 1 - max_l rho_l
    h = op_ref.shape[2]
    wd = op_ref.shape[3]
    inv_area = 1.0 / (4.0 * w * w)

    br = br_ref[...]
    bct = bct_ref[...]

    def box(p):
        # 2w x 2w box filter of the zero-padded p, as two MXU matmuls (padding absorbed).
        return jnp.dot(jnp.dot(br, p, preferred_element_type=jnp.float32),
                       bct, preferred_element_type=jnp.float32)

    # --- label-side statistics: computed once per batch (hoisted out of the channel loop) ---
    c2s, sjjs = [], []
    for l in range(n_lab):
        lab = lab_ref[0, l, :, :]
        mu2 = box(lab) * inv_area
        c2 = lab - mu2
        c2s.append(c2)
        sjjs.append(jnp.maximum(box(c2 * c2), _EPS))

    # --- per output channel ---
    # TODO(synk): switch the unrolled channel/label loops to lax.fori_loop if C*L grows
    #             large enough to spill vregs.
    for ci in range(n_chan):
        img = op_ref[0, ci, :, :]
        mu1 = box(img) * inv_area
        c1 = img - mu1
        sii = jnp.maximum(box(c1 * c1), _EPS)

        y = jnp.full((h, wd), -jnp.inf, dtype=jnp.float32)
        for l in range(n_lab):
            sij = box(c1 * c2s[l])
            denom = jnp.sqrt(sii * sjjs[l]) + _EPS
            rho = sij * pl.reciprocal(denom, approx=True)     # divide -> EUP slot
            y = jnp.maximum(y, jnp.maximum(rho, -1.0))        # clamp(min=-1), amax over labels

        x = 1.0 - jnp.clip(y, -1.0, 1.0)                      # clip(Y,-1,1); X = 1 - Y
        out_ref[0, ci, :, :] = jnp.mean(x).reshape(1, 1)      # spatial mean for this (b, c)


def d_rho(outputs, labels, sigma):
    """Returns (Lxcorr, mean(X, dims=(2,3))) exactly like the PyTorch module."""
    scale = sigma // 2
    w = int(math.ceil(scale))
    b, c, h, wd = outputs.shape
    n_lab = labels.shape[1]

    br = _band_matrix(h, w)            # (H, H)
    bct = _band_matrix(wd, w).T        # (W, W), pre-transposed so box = (br @ P) @ bct

    kernel = functools.partial(_d_rho_kernel, w=w, n_chan=c, n_lab=n_lab)
    xmean4 = pl.pallas_call(
        kernel,
        out_shape=jax.ShapeDtypeStruct((b, c, 1, 1), jnp.float32),
        grid_spec=pltpu.PrefetchScalarGridSpec(
            num_scalar_prefetch=0,
            grid=(b,),
            in_specs=[
                pl.BlockSpec((h, h), lambda bi: (0, 0)),
                pl.BlockSpec((wd, wd), lambda bi: (0, 0)),
                pl.BlockSpec((1, c, h, wd), lambda bi: (bi, 0, 0, 0)),
                pl.BlockSpec((1, n_lab, h, wd), lambda bi: (bi, 0, 0, 0)),
            ],
            out_specs=pl.BlockSpec((1, c, 1, 1), lambda bi: (bi, 0, 0, 0)),
        ),
        compiler_params=pltpu.CompilerParams(
            dimension_semantics=("parallel",),            # batch axis across cores (v7x-safe)
            vmem_limit_bytes=32 * 1024 * 1024),           # lift v5e's 16 MiB scoped default
    )(br, bct, outputs.astype(jnp.float32), labels.astype(jnp.float32))

    xmean = xmean4[:, :, 0, 0]                            # (B, C) == torch.mean(X, dim=(2,3))
    lxcorr = jnp.mean(xmean)                              # == torch.mean(X) (equal-sized cells)
    return lxcorr, xmean


def _d_rho_reference(outputs, labels, sigma):
    """Pure-JAX reference mirroring the torch cumsum formulation (for validation)."""
    scale = sigma // 2
    w = int(math.ceil(scale))

    def xcorr(img1, img2):
        img1 = jnp.pad(img1, ((0, 0), (0, 0), (w, w), (w, w)))
        img2 = jnp.pad(img2, ((0, 0), (0, 0), (w, w), (w, w)))

        def box(a):
            cs = jnp.cumsum(jnp.cumsum(a, -1), -2)
            return (cs[:, :, 2 * w:, 2 * w:] - cs[:, :, :-2 * w, 2 * w:]
                    - cs[:, :, 2 * w:, :-2 * w] + cs[:, :, :-2 * w, :-2 * w])

        mu1 = box(img1) / (4 * w ** 2)
        mu2 = box(img2) / (4 * w ** 2)
        c1 = img1[:, :, w:-w, w:-w] - mu1
        c2 = img2[:, :, w:-w, w:-w] - mu2
        c1 = jnp.pad(c1, ((0, 0), (0, 0), (w, w), (w, w)))
        c2 = jnp.pad(c2, ((0, 0), (0, 0), (w, w), (w, w)))
        sii = jnp.maximum(box(c1 * c1), _EPS)
        sjj = jnp.maximum(box(c2 * c2), _EPS)
        sij = box(c1 * c2)
        return sij / (jnp.sqrt(sii * sjj) + _EPS)

    ys = [jnp.maximum(xcorr(outputs, labels[:, i:i + 1]), -1.0)
          for i in range(labels.shape[1])]
    y = jnp.clip(jnp.max(jnp.stack(ys, -1), -1), -1.0, 1.0)
    x = 1.0 - y
    return jnp.mean(x), jnp.mean(x, axis=(2, 3))


if __name__ == "__main__":
    key = jax.random.PRNGKey(0)
    k1, k2 = jax.random.split(key)
    B, C, H, W = 2, 4, 16, 16
    L = 3
    sigma = 4                                   # module "parameter": scale = sigma // 2 = 2
    outputs = jax.random.normal(k1, (B, C, H, W), dtype=jnp.float32)
    labels = jax.random.normal(k2, (B, L, H, W), dtype=jnp.float32)

    lxcorr, xmean = jax.jit(functools.partial(d_rho, sigma=sigma))(outputs, labels)
    jax.block_until_ready((lxcorr, xmean))

    ref_l, ref_m = _d_rho_reference(outputs, labels, sigma)
    assert xmean.shape == (B, C)
    assert jnp.allclose(lxcorr, ref_l, atol=1e-3), (lxcorr, ref_l)
    assert jnp.allclose(xmean, ref_m, atol=1e-3)

    print("KERNEL_OK")
</pallas_src>

<mosaic_0001>
module attributes {stable_mosaic.version = 11 : i64} {
  func.func @_d_rho_kernel(%arg0: i32, %arg1: memref<16x16xf32, #tpu.memory_space<vmem>>, %arg2: memref<16x16xf32, #tpu.memory_space<vmem>>, %arg3: memref<1x4x16x16xf32, #tpu.memory_space<vmem>>, %arg4: memref<1x3x16x16xf32, #tpu.memory_space<vmem>>, %arg5: memref<1x4x1x1xf32, #tpu.memory_space<vmem>>) attributes {dimension_semantics = [#tpu.dimension_semantics<parallel>], iteration_bounds = array<i64: 2>, scalar_prefetch = 0 : i64, scratch_operands = 0 : i64, tpu.core_type = #tpu.core_type<tc>, window_params = [{pipeline_mode = #tpu.pipeline_mode<synchronous>, transform_indices = @transform_0, window_bounds = array<i64: 16, 16>}, {pipeline_mode = #tpu.pipeline_mode<synchronous>, transform_indices = @transform_1, window_bounds = array<i64: 16, 16>}, {transform_indices = @transform_2, window_bounds = array<i64: 1, 4, 16, 16>}, {transform_indices = @transform_3, window_bounds = array<i64: 1, 3, 16, 16>}, {transform_indices = @transform_4, window_bounds = array<i64: 1, 4, 1, 1>}]} {
    %c0 = arith.constant 0 : index
    %c0_0 = arith.constant 0 : index
    %0 = vector.load %arg1[%c0, %c0_0] : memref<16x16xf32, #tpu.memory_space<vmem>>, vector<16x16xf32>
    %c0_1 = arith.constant 0 : index
    %c0_2 = arith.constant 0 : index
    %1 = vector.load %arg2[%c0_1, %c0_2] : memref<16x16xf32, #tpu.memory_space<vmem>>, vector<16x16xf32>
    %c0_3 = arith.constant 0 : index
    %c0_4 = arith.constant 0 : index
    %c0_5 = arith.constant 0 : index
    %c0_6 = arith.constant 0 : index
    %2 = vector.load %arg4[%c0_3, %c0_4, %c0_5, %c0_6] : memref<1x3x16x16xf32, #tpu.memory_space<vmem>>, vector<1x1x16x16xf32>
    %3 = vector.shape_cast %2 : vector<1x1x16x16xf32> to vector<16x16xf32>
    %cst = arith.constant dense<0.000000e+00> : vector<16x16xf32>
    %4 = tpu.matmul %0, %3, %cst {dimension_numbers = #tpu.dot_dimension_numbers<[1], [0], [0], [1], [0, 0, 1, 1], [], []>} : vector<16x16xf32>, vector<16x16xf32>, vector<16x16xf32> -> vector<16x16xf32>
    %cst_7 = arith.constant dense<0.000000e+00> : vector<16x16xf32>
    %5 = tpu.matmul %4, %1, %cst_7 {dimension_numbers = #tpu.dot_dimension_numbers<[1], [0], [0], [1], [0, 0, 1, 1], [], []>} : vector<16x16xf32>, vector<16x16xf32>, vector<16x16xf32> -> vector<16x16xf32>
    %cst_8 = arith.constant 6.250000e-02 : f32
    %6 = vector.broadcast %cst_8 : f32 to vector<16x16xf32>
    %7 = arith.mulf %5, %6 : vector<16x16xf32>
    %8 = arith.subf %3, %7 : vector<16x16xf32>
    %9 = arith.mulf %8, %8 : vector<16x16xf32>
    %cst_9 = arith.constant dense<0.000000e+00> : vector<16x16xf32>
    %10 = tpu.matmul %0, %9, %cst_9 {dimension_numbers = #tpu.dot_dimension_numbers<[1], [0], [0], [1], [0, 0, 1, 1], [], []>} : vector<16x16xf32>, vector<16x16xf32>, vector<16x16xf32> -> vector<16x16xf32>
    %cst_10 = arith.constant dense<0.000000e+00> : vector<16x16xf32>
    %11 = tpu.matmul %10, %1, %cst_10 {dimension_numbers = #tpu.dot_dimension_numbers<[1], [0], [0], [1], [0, 0, 1, 1], [], []>} : vector<16x16xf32>, vector<16x16xf32>, vector<16x16xf32> -> vector<16x16xf32>
    %cst_11 = arith.constant 9.99999968E-21 : f32
    %12 = vector.broadcast %cst_11 : f32 to vector<16x16xf32>
    %13 = arith.maximumf %11, %12 : vector<16x16xf32>
    %c0_12 = arith.constant 0 : index
    %c1 = arith.constant 1 : index
    %c0_13 = arith.constant 0 : index
    %c0_14 = arith.constant 0 : index
    %14 = vector.load %arg4[%c0_12, %c1, %c0_13, %c0_14] : memref<1x3x16x16xf32, #tpu.memory_space<vmem>>, vector<1x1x16x16xf32>
    %15 = vector.shape_cast %14 : vector<1x1x16x16xf32> to vector<16x16xf32>
    %cst_15 = arith.constant dense<0.000000e+00> : vector<16x16xf32>
    %16 = tpu.matmul %0, %15, %cst_15 {dimension_numbers = #tpu.dot_dimension_numbers<[1], [0], [0], [1], [0, 0, 1, 1], [], []>} : vector<16x16xf32>, vector<16x16xf32>, vector<16x16xf32> -> vector<16x16xf32>
    %cst_16 = arith.constant dense<0.000000e+00> : vector<16x16xf32>
    %17 = tpu.matmul %16, %1, %cst_16 {dimension_numbers = #tpu.dot_dimension_numbers<[1], [0], [0], [1], [0, 0, 1, 1], [], []>} : vector<16x16xf32>, vector<16x16xf32>, vector<16x16xf32> -> vector<16x16xf32>
    %cst_17 = arith.constant 6.250000e-02 : f32
    %18 = vector.broadcast %cst_17 : f32 to vector<16x16xf32>
    %19 = arith.mulf %17, %18 : vector<16x16xf32>
    %20 = arith.subf %15, %19 : vector<16x16xf32>
    %21 = arith.mulf %20, %20 : vector<16x16xf32>
    %cst_18 = arith.constant dense<0.000000e+00> : vector<16x16xf32>
    %22 = tpu.matmul %0, %21, %cst_18 {dimension_numbers = #tpu.dot_dimension_numbers<[1], [0], [0], [1], [0, 0, 1, 1], [], []>} : vector<16x16xf32>, vector<16x16xf32>, vector<16x16xf32> -> vector<16x16xf32>
    %cst_19 = arith.constant dense<0.000000e+00> : vector<16x16xf32>
    %23 = tpu.matmul %22, %1, %cst_19 {dimension_numbers = #tpu.dot_dimension_numbers<[1], [0], [0], [1], [0, 0, 1, 1], [], []>} : vector<16x16xf32>, vector<16x16xf32>, vector<16x16xf32> -> vector<16x16xf32>
    %cst_20 = arith.constant 9.99999968E-21 : f32
    %24 = vector.broadcast %cst_20 : f32 to vector<16x16xf32>
    %25 = arith.maximumf %23, %24 : vector<16x16xf32>
    %c0_21 = arith.constant 0 : index
    %c2 = arith.constant 2 : index
    %c0_22 = arith.constant 0 : index
    %c0_23 = arith.constant 0 : index
    %26 = vector.load %arg4[%c0_21, %c2, %c0_22, %c0_23] : memref<1x3x16x16xf32, #tpu.memory_space<vmem>>, vector<1x1x16x16xf32>
    %27 = vector.shape_cast %26 : vector<1x1x16x16xf32> to vector<16x16xf32>
    %cst_24 = arith.constant dense<0.000000e+00> : vector<16x16xf32>
    %28 = tpu.matmul %0, %27, %cst_24 {dimension_numbers = #tpu.dot_dimension_numbers<[1], [0], [0], [1], [0, 0, 1, 1], [], []>} : vector<16x16xf32>, vector<16x16xf32>, vector<16x16xf32> -> vector<16x16xf32>
    %cst_25 = arith.constant dense<0.000000e+00> : vector<16x16xf32>
    %29 = tpu.matmul %28, %1, %cst_25 {dimension_numbers = #tpu.dot_dimension_numbers<[1], [0], [0], [1], [0, 0, 1, 1], [], []>} : vector<16x16xf32>, vector<16x16xf32>, vector<16x16xf32> -> vector<16x16xf32>
    %cst_26 = arith.constant 6.250000e-02 : f32
    %30 = vector.broadcast %cst_26 : f32 to vector<16x16xf32>
    %31 = arith.mulf %29, %30 : vector<16x16xf32>
    %32 = arith.subf %27, %31 : vector<16x16xf32>
    %33 = arith.mulf %32, %32 : vector<16x16xf32>
    %cst_27 = arith.constant dense<0.000000e+00> : vector<16x16xf32>
    %34 = tpu.matmul %0, %33, %cst_27 {dimension_numbers = #tpu.dot_dimension_numbers<[1], [0], [0], [1], [0, 0, 1, 1], [], []>} : vector<16x16xf32>, vector<16x16xf32>, vector<16x16xf32> -> vector<16x16xf32>
    %cst_28 = arith.constant dense<0.000000e+00> : vector<16x16xf32>
    %35 = tpu.matmul %34, %1, %cst_28 {dimension_numbers = #tpu.dot_dimension_numbers<[1], [0], [0], [1], [0, 0, 1, 1], [], []>} : vector<16x16xf32>, vector<16x16xf32>, vector<16x16xf32> -> vector<16x16xf32>
    %cst_29 = arith.constant 9.99999968E-21 : f32
    %36 = vector.broadcast %cst_29 : f32 to vector<16x16xf32>
    %37 = arith.maximumf %35, %36 : vector<16x16xf32>
    %c0_30 = arith.constant 0 : index
    %c0_31 = arith.constant 0 : index
    %c0_32 = arith.constant 0 : index
    %c0_33 = arith.constant 0 : index
    %38 = vector.load %arg3[%c0_30, %c0_31, %c0_32, %c0_33] : memref<1x4x16x16xf32, #tpu.memory_space<vmem>>, vector<1x1x16x16xf32>
    %39 = vector.shape_cast %38 : vector<1x1x16x16xf32> to vector<16x16xf32>
    %cst_34 = arith.constant dense<0.000000e+00> : vector<16x16xf32>
    %40 = tpu.matmul %0, %39, %cst_34 {dimension_numbers = #tpu.dot_dimension_numbers<[1], [0], [0], [1], [0, 0, 1, 1], [], []>} : vector<16x16xf32>, vector<16x16xf32>, vector<16x16xf32> -> vector<16x16xf32>
    %cst_35 = arith.constant dense<0.000000e+00> : vector<16x16xf32>
    %41 = tpu.matmul %40, %1, %cst_35 {dimension_numbers = #tpu.dot_dimension_numbers<[1], [0], [0], [1], [0, 0, 1, 1], [], []>} : vector<16x16xf32>, vector<16x16xf32>, vector<16x16xf32> -> vector<16x16xf32>
    %cst_36 = arith.constant 6.250000e-02 : f32
    %42 = vector.broadcast %cst_36 : f32 to vector<16x16xf32>
    %43 = arith.mulf %41, %42 : vector<16x16xf32>
    %44 = arith.subf %39, %43 : vector<16x16xf32>
    %45 = arith.mulf %44, %44 : vector<16x16xf32>
    %cst_37 = arith.constant dense<0.000000e+00> : vector<16x16xf32>
    %46 = tpu.matmul %0, %45, %cst_37 {dimension_numbers = #tpu.dot_dimension_numbers<[1], [0], [0], [1], [0, 0, 1, 1], [], []>} : vector<16x16xf32>, vector<16x16xf32>, vector<16x16xf32> -> vector<16x16xf32>
    %cst_38 = arith.constant dense<0.000000e+00> : vector<16x16xf32>
    %47 = tpu.matmul %46, %1, %cst_38 {dimension_numbers = #tpu.dot_dimension_numbers<[1], [0], [0], [1], [0, 0, 1, 1], [], []>} : vector<16x16xf32>, vector<16x16xf32>, vector<16x16xf32> -> vector<16x16xf32>
    %cst_39 = arith.constant 9.99999968E-21 : f32
    %48 = vector.broadcast %cst_39 : f32 to vector<16x16xf32>
    %49 = arith.maximumf %47, %48 : vector<16x16xf32>
    %cst_40 = arith.constant 0xFF800000 : f32
    %50 = vector.broadcast %cst_40 : f32 to vector<16x16xf32>
    %51 = arith.mulf %44, %8 : vector<16x16xf32>
    %cst_41 = arith.constant dense<0.000000e+00> : vector<16x16xf32>
    %52 = tpu.matmul %0, %51, %cst_41 {dimension_numbers = #tpu.dot_dimension_numbers<[1], [0], [0], [1], [0, 0, 1, 1], [], []>} : vector<16x16xf32>, vector<16x16xf32>, vector<16x16xf32> -> vector<16x16xf32>
    %cst_42 = arith.constant dense<0.000000e+00> : vector<16x16xf32>
    %53 = tpu.matmul %52, %1, %cst_42 {dimension_numbers = #tpu.dot_dimension_numbers<[1], [0], [0], [1], [0, 0, 1, 1], [], []>} : vector<16x16xf32>, vector<16x16xf32>, vector<16x16xf32> -> vector<16x16xf32>
    %54 = arith.mulf %49, %13 : vector<16x16xf32>
    %55 = math.sqrt %54 : vector<16x16xf32>
    %cst_43 = arith.constant 9.99999968E-21 : f32
    %56 = vector.broadcast %cst_43 : f32 to vector<16x16xf32>
    %57 = arith.addf %55, %56 : vector<16x16xf32>
    %58 = tpu.reciprocal %57 {approx = true} : vector<16x16xf32> -> vector<16x16xf32>
    %59 = arith.mulf %53, %58 : vector<16x16xf32>
    %cst_44 = arith.constant -1.000000e+00 : f32
    %60 = vector.broadcast %cst_44 : f32 to vector<16x16xf32>
    %61 = arith.maximumf %59, %60 : vector<16x16xf32>
    %62 = arith.maximumf %50, %61 : vector<16x16xf32>
    %63 = arith.mulf %44, %20 : vector<16x16xf32>
    %cst_45 = arith.constant dense<0.000000e+00> : vector<16x16xf32>
    %64 = tpu.matmul %0, %63, %cst_45 {dimension_numbers = #tpu.dot_dimension_numbers<[1], [0], [0], [1], [0, 0, 1, 1], [], []>} : vector<16x16xf32>, vector<16x16xf32>, vector<16x16xf32> -> vector<16x16xf32>
    %cst_46 = arith.constant dense<0.000000e+00> : vector<16x16xf32>
    %65 = tpu.matmul %64, %1, %cst_46 {dimension_numbers = #tpu.dot_dimension_numbers<[1], [0], [0], [1], [0, 0, 1, 1], [], []>} : vector<16x16xf32>, vector<16x16xf32>, vector<16x16xf32> -> vector<16x16xf32>
    %66 = arith.mulf %49, %25 : vector<16x16xf32>
    %67 = math.sqrt %66 : vector<16x16xf32>
    %cst_47 = arith.constant 9.99999968E-21 : f32
    %68 = vector.broadcast %cst_47 : f32 to vector<16x16xf32>
    %69 = arith.addf %67, %68 : vector<16x16xf32>
    %70 = tpu.reciprocal %69 {approx = true} : vector<16x16xf32> -> vector<16x16xf32>
    %71 = arith.mulf %65, %70 : vector<16x16xf32>
    %cst_48 = arith.constant -1.000000e+00 : f32
    %72 = vector.broadcast %cst_48 : f32 to vector<16x16xf32>
    %73 = arith.maximumf %71, %72 : vector<16x16xf32>
    %74 = arith.maximumf %62, %73 : vector<16x16xf32>
    %75 = arith.mulf %44, %32 : vector<16x16xf32>
    %cst_49 = arith.constant dense<0.000000e+00> : vector<16x16xf32>
    %76 = tpu.matmul %0, %75, %cst_49 {dimension_numbers = #tpu.dot_dimension_numbers<[1], [0], [0], [1], [0, 0, 1, 1], [], []>} : vector<16x16xf32>, vector<16x16xf32>, vector<16x16xf32> -> vector<16x16xf32>
    %cst_50 = arith.constant dense<0.000000e+00> : vector<16x16xf32>
    %77 = tpu.matmul %76, %1, %cst_50 {dimension_numbers = #tpu.dot_dimension_numbers<[1], [0], [0], [1], [0, 0, 1, 1], [], []>} : vector<16x16xf32>, vector<16x16xf32>, vector<16x16xf32> -> vector<16x16xf32>
    %78 = arith.mulf %49, %37 : vector<16x16xf32>
    %79 = math.sqrt %78 : vector<16x16xf32>
    %cst_51 = arith.constant 9.99999968E-21 : f32
    %80 = vector.broadcast %cst_51 : f32 to vector<16x16xf32>
    %81 = arith.addf %79, %80 : vector<16x16xf32>
    %82 = tpu.reciprocal %81 {approx = true} : vector<16x16xf32> -> vector<16x16xf32>
    %83 = arith.mulf %77, %82 : vector<16x16xf32>
    %cst_52 = arith.constant -1.000000e+00 : f32
    %84 = vector.broadcast %cst_52 : f32 to vector<16x16xf32>
    %85 = arith.maximumf %83, %84 : vector<16x16xf32>
    %86 = arith.maximumf %74, %85 : vector<16x16xf32>
    %cst_53 = arith.constant -1.000000e+00 : f32
    %cst_54 = arith.constant 1.000000e+00 : f32
    %87 = vector.broadcast %cst_53 : f32 to vector<16x16xf32>
    %88 = arith.maximumf %87, %86 : vector<16x16xf32>
    %89 = vector.broadcast %cst_54 : f32 to vector<16x16xf32>
    %90 = arith.minimumf %89, %88 : vector<16x16xf32>
    %cst_55 = arith.constant 1.000000e+00 : f32
    %91 = vector.broadcast %cst_55 : f32 to vector<16x16xf32>
    %92 = arith.subf %91, %90 : vector<16x16xf32>
    %93 = vector.shape_cast %92 : vector<16x16xf32> to vector<1x16x16xf32>
    %cst_56 = arith.constant dense<0.000000e+00> : vector<1xf32>
    %94 = vector.multi_reduction <add>, %93, %cst_56 [1, 2] : vector<1x16x16xf32> to vector<1xf32>
    %95 = vector.shape_cast %94 : vector<1xf32> to vector<1x1x1xf32>
    %96 = vector.extract %95[0, 0, 0] : f32 from vector<1x1x1xf32>
    %cst_57 = arith.constant 2.560000e+02 : f32
    %97 = arith.divf %96, %cst_57 : f32
    %98 = vector.broadcast %97 : f32 to vector<1x1xf32>
    %c0_58 = arith.constant 0 : index
    %c0_59 = arith.constant 0 : index
    %c0_60 = arith.constant 0 : index
    %c0_61 = arith.constant 0 : index
    %99 = vector.load %arg5[%c0_58, %c0_59, %c0_60, %c0_61] : memref<1x4x1x1xf32, #tpu.memory_space<vmem>>, vector<1x1x1x1xf32>
    %100 = vector.shape_cast %99 : vector<1x1x1x1xf32> to vector<1x1xf32>
    %101 = vector.shape_cast %98 : vector<1x1xf32> to vector<1x1x1x1xf32>
    tpu.vector_store %arg5[%c0_58, %c0_59, %c0_60, %c0_61], %101 {strides = array<i32>} : memref<1x4x1x1xf32, #tpu.memory_space<vmem>>, vector<1x1x1x1xf32>,
    %c0_62 = arith.constant 0 : index
    %c1_63 = arith.constant 1 : index
    %c0_64 = arith.constant 0 : index
    %c0_65 = arith.constant 0 : index
    %102 = vector.load %arg3[%c0_62, %c1_63, %c0_64, %c0_65] : memref<1x4x16x16xf32, #tpu.memory_space<vmem>>, vector<1x1x16x16xf32>
    %103 = vector.shape_cast %102 : vector<1x1x16x16xf32> to vector<16x16xf32>
    %cst_66 = arith.constant dense<0.000000e+00> : vector<16x16xf32>
    %104 = tpu.matmul %0, %103, %cst_66 {dimension_numbers = #tpu.dot_dimension_numbers<[1], [0], [0], [1], [0, 0, 1, 1], [], []>} : vector<16x16xf32>, vector<16x16xf32>, vector<16x16xf32> -> vector<16x16xf32>
    %cst_67 = arith.constant dense<0.000000e+00> : vector<16x16xf32>
    %105 = tpu.matmul %104, %1, %cst_67 {dimension_numbers = #tpu.dot_dimension_numbers<[1], [0], [0], [1], [0, 0, 1, 1], [], []>} : vector<16x16xf32>, vector<16x16xf32>, vector<16x16xf32> -> vector<16x16xf32>
    %cst_68 = arith.constant 6.250000e-02 : f32
    %106 = vector.broadcast %cst_68 : f32 to vector<16x16xf32>
    %107 = arith.mulf %105, %106 : vector<16x16xf32>
    %108 = arith.subf %103, %107 : vector<16x16xf32>
    %109 = arith.mulf %108, %108 : vector<16x16xf32>
    %cst_69 = arith.constant dense<0.000000e+00> : vector<16x16xf32>
    %110 = tpu.matmul %0, %109, %cst_69 {dimension_numbers = #tpu.dot_dimension_numbers<[1], [0], [0], [1], [0, 0, 1, 1], [], []>} : vector<16x16xf32>, vector<16x16xf32>, vector<16x16xf32> -> vector<16x16xf32>
    %cst_70 = arith.constant dense<0.000000e+00> : vector<16x16xf32>
    %111 = tpu.matmul %110, %1, %cst_70 {dimension_numbers = #tpu.dot_dimension_numbers<[1], [0], [0], [1], [0, 0, 1, 1], [], []>} : vector<16x16xf32>, vector<16x16xf32>, vector<16x16xf32> -> vector<16x16xf32>
    %cst_71 = arith.constant 9.99999968E-21 : f32
    %112 = vector.broadcast %cst_71 : f32 to vector<16x16xf32>
    %113 = arith.maximumf %111, %112 : vector<16x16xf32>
    %cst_72 = arith.constant 0xFF800000 : f32
    %114 = vector.broadcast %cst_72 : f32 to vector<16x16xf32>
    %115 = arith.mulf %108, %8 : vector<16x16xf32>
    %cst_73 = arith.constant dense<0.000000e+00> : vector<16x16xf32>
    %116 = tpu.matmul %0, %115, %cst_73 {dimension_numbers = #tpu.dot_dimension_numbers<[1], [0], [0], [1], [0, 0, 1, 1], [], []>} : vector<16x16xf32>, vector<16x16xf32>, vector<16x16xf32> -> vector<16x16xf32>
    %cst_74 = arith.constant dense<0.000000e+00> : vector<16x16xf32>
    %117 = tpu.matmul %116, %1, %cst_74 {dimension_numbers = #tpu.dot_dimension_numbers<[1], [0], [0], [1], [0, 0, 1, 1], [], []>} : vector<16x16xf32>, vector<16x16xf32>, vector<16x16xf32> -> vector<16x16xf32>
    %118 = arith.mulf %113, %13 : vector<16x16xf32>
    %119 = math.sqrt %118 : vector<16x16xf32>
    %cst_75 = arith.constant 9.99999968E-21 : f32
    %120 = vector.broadcast %cst_75 : f32 to vector<16x16xf32>
    %121 = arith.addf %119, %120 : vector<16x16xf32>
    %122 = tpu.reciprocal %121 {approx = true} : vector<16x16xf32> -> vector<16x16xf32>
    %123 = arith.mulf %117, %122 : vector<16x16xf32>
    %cst_76 = arith.constant -1.000000e+00 : f32
    %124 = vector.broadcast %cst_76 : f32 to vector<16x16xf32>
    %125 = arith.maximumf %123, %124 : vector<16x16xf32>
    %126 = arith.maximumf %114, %125 : vector<16x16xf32>
    %127 = arith.mulf %108, %20 : vector<16x16xf32>
    %cst_77 = arith.constant dense<0.000000e+00> : vector<16x16xf32>
    %128 = tpu.matmul %0, %127, %cst_77 {dimension_numbers = #tpu.dot_dimension_numbers<[1], [0], [0], [1], [0, 0, 1, 1], [], []>} : vector<16x16xf32>, vector<16x16xf32>, vector<16x16xf32> -> vector<16x16xf32>
    %cst_78 = arith.constant dense<0.000000e+00> : vector<16x16xf32>
    %129 = tpu.matmul %128, %1, %cst_78 {dimension_numbers = #tpu.dot_dimension_numbers<[1], [0], [0], [1], [0, 0, 1, 1], [], []>} : vector<16x16xf32>, vector<16x16xf32>, vector<16x16xf32> -> vector<16x16xf32>
    %130 = arith.mulf %113, %25 : vector<16x16xf32>
    %131 = math.sqrt %130 : vector<16x16xf32>
    %cst_79 = arith.constant 9.99999968E-21 : f32
    %132 = vector.broadcast %cst_79 : f32 to vector<16x16xf32>
    %133 = arith.addf %131, %132 : vector<16x16xf32>
    %134 = tpu.reciprocal %133 {approx = true} : vector<16x16xf32> -> vector<16x16xf32>
    %135 = arith.mulf %129, %134 : vector<16x16xf32>
    %cst_80 = arith.constant -1.000000e+00 : f32
    %136 = vector.broadcast %cst_80 : f32 to vector<16x16xf32>
    %137 = arith.maximumf %135, %136 : vector<16x16xf32>
    %138 = arith.maximumf %126, %137 : vector<16x16xf32>
    %139 = arith.mulf %108, %32 : vector<16x16xf32>
    %cst_81 = arith.constant dense<0.000000e+00> : vector<16x16xf32>
    %140 = tpu.matmul %0, %139, %cst_81 {dimension_numbers = #tpu.dot_dimension_numbers<[1], [0], [0], [1], [0, 0, 1, 1], [], []>} : vector<16x16xf32>, vector<16x16xf32>, vector<16x16xf32> -> vector<16x16xf32>
    %cst_82 = arith.constant dense<0.000000e+00> : vector<16x16xf32>
    %141 = tpu.matmul %140, %1, %cst_82 {dimension_numbers = #tpu.dot_dimension_numbers<[1], [0], [0], [1], [0, 0, 1, 1], [], []>} : vector<16x16xf32>, vector<16x16xf32>, vector<16x16xf32> -> vector<16x16xf32>
    %142 = arith.mulf %113, %37 : vector<16x16xf32>
    %143 = math.sqrt %142 : vector<16x16xf32>
    %cst_83 = arith.constant 9.99999968E-21 : f32
    %144 = vector.broadcast %cst_83 : f32 to vector<16x16xf32>
    %145 = arith.addf %143, %144 : vector<16x16xf32>
    %146 = tpu.reciprocal %145 {approx = true} : vector<16x16xf32> -> vector<16x16xf32>
    %147 = arith.mulf %141, %146 : vector<16x16xf32>
    %cst_84 = arith.constant -1.000000e+00 : f32
    %148 = vector.broadcast %cst_84 : f32 to vector<16x16xf32>
    %149 = arith.maximumf %147, %148 : vector<16x16xf32>
    %150 = arith.maximumf %138, %149 : vector<16x16xf32>
    %cst_85 = arith.constant -1.000000e+00 : f32
    %cst_86 = arith.constant 1.000000e+00 : f32
    %151 = vector.broadcast %cst_85 : f32 to vector<16x16xf32>
    %152 = arith.maximumf %151, %150 : vector<16x16xf32>
    %153 = vector.broadcast %cst_86 : f32 to vector<16x16xf32>
    %154 = arith.minimumf %153, %152 : vector<16x16xf32>
    %cst_87 = arith.constant 1.000000e+00 : f32
    %155 = vector.broadcast %cst_87 : f32 to vector<16x16xf32>
    %156 = arith.subf %155, %154 : vector<16x16xf32>
    %157 = vector.shape_cast %156 : vector<16x16xf32> to vector<1x16x16xf32>
    %cst_88 = arith.constant dense<0.000000e+00> : vector<1xf32>
    %158 = vector.multi_reduction <add>, %157, %cst_88 [1, 2] : vector<1x16x16xf32> to vector<1xf32>
    %159 = vector.shape_cast %158 : vector<1xf32> to vector<1x1x1xf32>
    %160 = vector.extract %159[0, 0, 0] : f32 from vector<1x1x1xf32>
    %cst_89 = arith.constant 2.560000e+02 : f32
    %161 = arith.divf %160, %cst_89 : f32
    %162 = vector.broadcast %161 : f32 to vector<1x1xf32>
    %c0_90 = arith.constant 0 : index
    %c1_91 = arith.constant 1 : index
    %c0_92 = arith.constant 0 : index
    %c0_93 = arith.constant 0 : index
    %163 = vector.load %arg5[%c0_90, %c1_91, %c0_92, %c0_93] : memref<1x4x1x1xf32, #tpu.memory_space<vmem>>, vector<1x1x1x1xf32>
    %164 = vector.shape_cast %163 : vector<1x1x1x1xf32> to vector<1x1xf32>
    %165 = vector.shape_cast %162 : vector<1x1xf32> to vector<1x1x1x1xf32>
    tpu.vector_store %arg5[%c0_90, %c1_91, %c0_92, %c0_93], %165 {strides = array<i32>} : memref<1x4x1x1xf32, #tpu.memory_space<vmem>>, vector<1x1x1x1xf32>,
    %c0_94 = arith.constant 0 : index
    %c2_95 = arith.constant 2 : index
    %c0_96 = arith.constant 0 : index
    %c0_97 = arith.constant 0 : index
    %166 = vector.load %arg3[%c0_94, %c2_95, %c0_96, %c0_97] : memref<1x4x16x16xf32, #tpu.memory_space<vmem>>, vector<1x1x16x16xf32>
    %167 = vector.shape_cast %166 : vector<1x1x16x16xf32> to vector<16x16xf32>
    %cst_98 = arith.constant dense<0.000000e+00> : vector<16x16xf32>
    %168 = tpu.matmul %0, %167, %cst_98 {dimension_numbers = #tpu.dot_dimension_numbers<[1], [0], [0], [1], [0, 0, 1, 1], [], []>} : vector<16x16xf32>, vector<16x16xf32>, vector<16x16xf32> -> vector<16x16xf32>
    %cst_99 = arith.constant dense<0.000000e+00> : vector<16x16xf32>
    %169 = tpu.matmul %168, %1, %cst_99 {dimension_numbers = #tpu.dot_dimension_numbers<[1], [0], [0], [1], [0, 0, 1, 1], [], []>} : vector<16x16xf32>, vector<16x16xf32>, vector<16x16xf32> -> vector<16x16xf32>
    %cst_100 = arith.constant 6.250000e-02 : f32
    %170 = vector.broadcast %cst_100 : f32 to vector<16x16xf32>
    %171 = arith.mulf %169, %170 : vector<16x16xf32>
    %172 = arith.subf %167, %171 : vector<16x16xf32>
    %173 = arith.mulf %172, %172 : vector<16x16xf32>
    %cst_101 = arith.constant dense<0.000000e+00> : vector<16x16xf32>
    %174 = tpu.matmul %0, %173, %cst_101 {dimension_numbers = #tpu.dot_dimension_numbers<[1], [0], [0], [1], [0, 0, 1, 1], [], []>} : vector<16x16xf32>, vector<16x16xf32>, vector<16x16xf32> -> vector<16x16xf32>
    %cst_102 = arith.constant dense<0.000000e+00> : vector<16x16xf32>
    %175 = tpu.matmul %174, %1, %cst_102 {dimension_numbers = #tpu.dot_dimension_numbers<[1], [0], [0], [1], [0, 0, 1, 1], [], []>} : vector<16x16xf32>, vector<16x16xf32>, vector<16x16xf32> -> vector<16x16xf32>
    %cst_103 = arith.constant 9.99999968E-21 : f32
    %176 = vector.broadcast %cst_103 : f32 to vector<16x16xf32>
    %177 = arith.maximumf %175, %176 : vector<16x16xf32>
    %cst_104 = arith.constant 0xFF800000 : f32
    %178 = vector.broadcast %cst_104 : f32 to vector<16x16xf32>
    %179 = arith.mulf %172, %8 : vector<16x16xf32>
    %cst_105 = arith.constant dense<0.000000e+00> : vector<16x16xf32>
    %180 = tpu.matmul %0, %179, %cst_105 {dimension_numbers = #tpu.dot_dimension_numbers<[1], [0], [0], [1], [0, 0, 1, 1], [], []>} : vector<16x16xf32>, vector<16x16xf32>, vector<16x16xf32> -> vector<16x16xf32>
    %cst_106 = arith.constant dense<0.000000e+00> : vector<16x16xf32>
    %181 = tpu.matmul %180, %1, %cst_106 {dimension_numbers = #tpu.dot_dimension_numbers<[1], [0], [0], [1], [0, 0, 1, 1], [], []>} : vector<16x16xf32>, vector<16x16xf32>, vector<16x16xf32> -> vector<16x16xf32>
    %182 = arith.mulf %177, %13 : vector<16x16xf32>
    %183 = math.sqrt %182 : vector<16x16xf32>
    %cst_107 = arith.constant 9.99999968E-21 : f32
    %184 = vector.broadcast %cst_107 : f32 to vector<16x16xf32>
    %185 = arith.addf %183, %184 : vector<16x16xf32>
    %186 = tpu.reciprocal %185 {approx = true} : vector<16x16xf32> -> vector<16x16xf32>
    %187 = arith.mulf %181, %186 : vector<16x16xf32>
    %cst_108 = arith.constant -1.000000e+00 : f32
    %188 = vector.broadcast %cst_108 : f32 to vector<16x16xf32>
    %189 = arith.maximumf %187, %188 : vector<16x16xf32>
    %190 = arith.maximumf %178, %189 : vector<16x16xf32>
    %191 = arith.mulf %172, %20 : vector<16x16xf32>
    %cst_109 = arith.constant dense<0.000000e+00> : vector<16x16xf32>
    %192 = tpu.matmul %0, %191, %cst_109 {dimension_numbers = #tpu.dot_dimension_numbers<[1], [0], [0], [1], [0, 0, 1, 1], [], []>} : vector<16x16xf32>, vector<16x16xf32>, vector<16x16xf32> -> vector<16x16xf32>
    %cst_110 = arith.constant dense<0.000000e+00> : vector<16x16xf32>
    %193 = tpu.matmul %192, %1, %cst_110 {dimension_numbers = #tpu.dot_dimension_numbers<[1], [0], [0], [1], [0, 0, 1, 1], [], []>} : vector<16x16xf32>, vector<16x16xf32>, vector<16x16xf32> -> vector<16x16xf32>
    %194 = arith.mulf %177, %25 : vector<16x16xf32>
    %195 = math.sqrt %194 : vector<16x16xf32>
    %cst_111 = arith.constant 9.99999968E-21 : f32
    %196 = vector.broadcast %cst_111 : f32 to vector<16x16xf32>
    %197 = arith.addf %195, %196 : vector<16x16xf32>
    %198 = tpu.reciprocal %197 {approx = true} : vector<16x16xf32> -> vector<16x16xf32>
    %199 = arith.mulf %193, %198 : vector<16x16xf32>
    %cst_112 = arith.constant -1.000000e+00 : f32
    %200 = vector.broadcast %cst_112 : f32 to vector<16x16xf32>
    %201 = arith.maximumf %199, %200 : vector<16x16xf32>
    %202 = arith.maximumf %190, %201 : vector<16x16xf32>
    %203 = arith.mulf %172, %32 : vector<16x16xf32>
    %cst_113 = arith.constant dense<0.000000e+00> : vector<16x16xf32>
    %204 = tpu.matmul %0, %203, %cst_113 {dimension_numbers = #tpu.dot_dimension_numbers<[1], [0], [0], [1], [0, 0, 1, 1], [], []>} : vector<16x16xf32>, vector<16x16xf32>, vector<16x16xf32> -> vector<16x16xf32>
    %cst_114 = arith.constant dense<0.000000e+00> : vector<16x16xf32>
    %205 = tpu.matmul %204, %1, %cst_114 {dimension_numbers = #tpu.dot_dimension_numbers<[1], [0], [0], [1], [0, 0, 1, 1], [], []>} : vector<16x16xf32>, vector<16x16xf32>, vector<16x16xf32> -> vector<16x16xf32>
    %206 = arith.mulf %177, %37 : vector<16x16xf32>
    %207 = math.sqrt %206 : vector<16x16xf32>
    %cst_115 = arith.constant 9.99999968E-21 : f32
    %208 = vector.broadcast %cst_115 : f32 to vector<16x16xf32>
    %209 = arith.addf %207, %208 : vector<16x16xf32>
    %210 = tpu.reciprocal %209 {approx = true} : vector<16x16xf32> -> vector<16x16xf32>
    %211 = arith.mulf %205, %210 : vector<16x16xf32>
    %cst_116 = arith.constant -1.000000e+00 : f32
    %212 = vector.broadcast %cst_116 : f32 to vector<16x16xf32>
    %213 = arith.maximumf %211, %212 : vector<16x16xf32>
    %214 = arith.maximumf %202, %213 : vector<16x16xf32>
    %cst_117 = arith.constant -1.000000e+00 : f32
    %cst_118 = arith.constant 1.000000e+00 : f32
    %215 = vector.broadcast %cst_117 : f32 to vector<16x16xf32>
    %216 = arith.maximumf %215, %214 : vector<16x16xf32>
    %217 = vector.broadcast %cst_118 : f32 to vector<16x16xf32>
    %218 = arith.minimumf %217, %216 : vector<16x16xf32>
    %cst_119 = arith.constant 1.000000e+00 : f32
    %219 = vector.broadcast %cst_119 : f32 to vector<16x16xf32>
    %220 = arith.subf %219, %218 : vector<16x16xf32>
    %221 = vector.shape_cast %220 : vector<16x16xf32> to vector<1x16x16xf32>
    %cst_120 = arith.constant dense<0.000000e+00> : vector<1xf32>
    %222 = vector.multi_reduction <add>, %221, %cst_120 [1, 2] : vector<1x16x16xf32> to vector<1xf32>
    %223 = vector.shape_cast %222 : vector<1xf32> to vector<1x1x1xf32>
    %224 = vector.extract %223[0, 0, 0] : f32 from vector<1x1x1xf32>
    %cst_121 = arith.constant 2.560000e+02 : f32
    %225 = arith.divf %224, %cst_121 : f32
    %226 = vector.broadcast %225 : f32 to vector<1x1xf32>
    %c0_122 = arith.constant 0 : index
    %c2_123 = arith.constant 2 : index
    %c0_124 = arith.constant 0 : index
    %c0_125 = arith.constant 0 : index
    %227 = vector.load %arg5[%c0_122, %c2_123, %c0_124, %c0_125] : memref<1x4x1x1xf32, #tpu.memory_space<vmem>>, vector<1x1x1x1xf32>
    %228 = vector.shape_cast %227 : vector<1x1x1x1xf32> to vector<1x1xf32>
    %229 = vector.shape_cast %226 : vector<1x1xf32> to vector<1x1x1x1xf32>
    tpu.vector_store %arg5[%c0_122, %c2_123, %c0_124, %c0_125], %229 {strides = array<i32>} : memref<1x4x1x1xf32, #tpu.memory_space<vmem>>, vector<1x1x1x1xf32>,
    %c0_126 = arith.constant 0 : index
    %c3 = arith.constant 3 : index
    %c0_127 = arith.constant 0 : index
    %c0_128 = arith.constant 0 : index
    %230 = vector.load %arg3[%c0_126, %c3, %c0_127, %c0_128] : memref<1x4x16x16xf32, #tpu.memory_space<vmem>>, vector<1x1x16x16xf32>
    %231 = vector.shape_cast %230 : vector<1x1x16x16xf32> to vector<16x16xf32>
    %cst_129 = arith.constant dense<0.000000e+00> : vector<16x16xf32>
    %232 = tpu.matmul %0, %231, %cst_129 {dimension_numbers = #tpu.dot_dimension_numbers<[1], [0], [0], [1], [0, 0, 1, 1], [], []>} : vector<16x16xf32>, vector<16x16xf32>, vector<16x16xf32> -> vector<16x16xf32>
    %cst_130 = arith.constant dense<0.000000e+00> : vector<16x16xf32>
    %233 = tpu.matmul %232, %1, %cst_130 {dimension_numbers = #tpu.dot_dimension_numbers<[1], [0], [0], [1], [0, 0, 1, 1], [], []>} : vector<16x16xf32>, vector<16x16xf32>, vector<16x16xf32> -> vector<16x16xf32>
    %cst_131 = arith.constant 6.250000e-02 : f32
    %234 = vector.broadcast %cst_131 : f32 to vector<16x16xf32>
    %235 = arith.mulf %233, %234 : vector<16x16xf32>
    %236 = arith.subf %231, %235 : vector<16x16xf32>
    %237 = arith.mulf %236, %236 : vector<16x16xf32>
    %cst_132 = arith.constant dense<0.000000e+00> : vector<16x16xf32>
    %238 = tpu.matmul %0, %237, %cst_132 {dimension_numbers = #tpu.dot_dimension_numbers<[1], [0], [0], [1], [0, 0, 1, 1], [], []>} : vector<16x16xf32>, vector<16x16xf32>, vector<16x16xf32> -> vector<16x16xf32>
    %cst_133 = arith.constant dense<0.000000e+00> : vector<16x16xf32>
    %239 = tpu.matmul %238, %1, %cst_133 {dimension_numbers = #tpu.dot_dimension_numbers<[1], [0], [0], [1], [0, 0, 1, 1], [], []>} : vector<16x16xf32>, vector<16x16xf32>, vector<16x16xf32> -> vector<16x16xf32>
    %cst_134 = arith.constant 9.99999968E-21 : f32
    %240 = vector.broadcast %cst_134 : f32 to vector<16x16xf32>
    %241 = arith.maximumf %239, %240 : vector<16x16xf32>
    %cst_135 = arith.constant 0xFF800000 : f32
    %242 = vector.broadcast %cst_135 : f32 to vector<16x16xf32>
    %243 = arith.mulf %236, %8 : vector<16x16xf32>
    %cst_136 = arith.constant dense<0.000000e+00> : vector<16x16xf32>
    %244 = tpu.matmul %0, %243, %cst_136 {dimension_numbers = #tpu.dot_dimension_numbers<[1], [0], [0], [1], [0, 0, 1, 1], [], []>} : vector<16x16xf32>, vector<16x16xf32>, vector<16x16xf32> -> vector<16x16xf32>
    %cst_137 = arith.constant dense<0.000000e+00> : vector<16x16xf32>
    %245 = tpu.matmul %244, %1, %cst_137 {dimension_numbers = #tpu.dot_dimension_numbers<[1], [0], [0], [1], [0, 0, 1, 1], [], []>} : vector<16x16xf32>, vector<16x16xf32>, vector<16x16xf32> -> vector<16x16xf32>
    %246 = arith.mulf %241, %13 : vector<16x16xf32>
    %247 = math.sqrt %246 : vector<16x16xf32>
    %cst_138 = arith.constant 9.99999968E-21 : f32
    %248 = vector.broadcast %cst_138 : f32 to vector<16x16xf32>
    %249 = arith.addf %247, %248 : vector<16x16xf32>
    %250 = tpu.reciprocal %249 {approx = true} : vector<16x16xf32> -> vector<16x16xf32>
    %251 = arith.mulf %245, %250 : vector<16x16xf32>
    %cst_139 = arith.constant -1.000000e+00 : f32
    %252 = vector.broadcast %cst_139 : f32 to vector<16x16xf32>
    %253 = arith.maximumf %251, %252 : vector<16x16xf32>
    %254 = arith.maximumf %242, %253 : vector<16x16xf32>
    %255 = arith.mulf %236, %20 : vector<16x16xf32>
    %cst_140 = arith.constant dense<0.000000e+00> : vector<16x16xf32>
    %256 = tpu.matmul %0, %255, %cst_140 {dimension_numbers = #tpu.dot_dimension_numbers<[1], [0], [0], [1], [0, 0, 1, 1], [], []>} : vector<16x16xf32>, vector<16x16xf32>, vector<16x16xf32> -> vector<16x16xf32>
    %cst_141 = arith.constant dense<0.000000e+00> : vector<16x16xf32>
    %257 = tpu.matmul %256, %1, %cst_141 {dimension_numbers = #tpu.dot_dimension_numbers<[1], [0], [0], [1], [0, 0, 1, 1], [], []>} : vector<16x16xf32>, vector<16x16xf32>, vector<16x16xf32> -> vector<16x16xf32>
    %258 = arith.mulf %241, %25 : vector<16x16xf32>
    %259 = math.sqrt %258 : vector<16x16xf32>
    %cst_142 = arith.constant 9.99999968E-21 : f32
    %260 = vector.broadcast %cst_142 : f32 to vector<16x16xf32>
    %261 = arith.addf %259, %260 : vector<16x16xf32>
    %262 = tpu.reciprocal %261 {approx = true} : vector<16x16xf32> -> vector<16x16xf32>
    %263 = arith.mulf %257, %262 : vector<16x16xf32>
    %cst_143 = arith.constant -1.000000e+00 : f32
    %264 = vector.broadcast %cst_143 : f32 to vector<16x16xf32>
    %265 = arith.maximumf %263, %264 : vector<16x16xf32>
    %266 = arith.maximumf %254, %265 : vector<16x16xf32>
    %267 = arith.mulf %236, %32 : vector<16x16xf32>
    %cst_144 = arith.constant dense<0.000000e+00> : vector<16x16xf32>
    %268 = tpu.matmul %0, %267, %cst_144 {dimension_numbers = #tpu.dot_dimension_numbers<[1], [0], [0], [1], [0, 0, 1, 1], [], []>} : vector<16x16xf32>, vector<16x16xf32>, vector<16x16xf32> -> vector<16x16xf32>
    %cst_145 = arith.constant dense<0.000000e+00> : vector<16x16xf32>
    %269 = tpu.matmul %268, %1, %cst_145 {dimension_numbers = #tpu.dot_dimension_numbers<[1], [0], [0], [1], [0, 0, 1, 1], [], []>} : vector<16x16xf32>, vector<16x16xf32>, vector<16x16xf32> -> vector<16x16xf32>
    %270 = arith.mulf %241, %37 : vector<16x16xf32>
    %271 = math.sqrt %270 : vector<16x16xf32>
    %cst_146 = arith.constant 9.99999968E-21 : f32
    %272 = vector.broadcast %cst_146 : f32 to vector<16x16xf32>
    %273 = arith.addf %271, %272 : vector<16x16xf32>
    %274 = tpu.reciprocal %273 {approx = true} : vector<16x16xf32> -> vector<16x16xf32>
    %275 = arith.mulf %269, %274 : vector<16x16xf32>
    %cst_147 = arith.constant -1.000000e+00 : f32
    %276 = vector.broadcast %cst_147 : f32 to vector<16x16xf32>
    %277 = arith.maximumf %275, %276 : vector<16x16xf32>
    %278 = arith.maximumf %266, %277 : vector<16x16xf32>
    %cst_148 = arith.constant -1.000000e+00 : f32
    %cst_149 = arith.constant 1.000000e+00 : f32
    %279 = vector.broadcast %cst_148 : f32 to vector<16x16xf32>
    %280 = arith.maximumf %279, %278 : vector<16x16xf32>
    %281 = vector.broadcast %cst_149 : f32 to vector<16x16xf32>
    %282 = arith.minimumf %281, %280 : vector<16x16xf32>
    %cst_150 = arith.constant 1.000000e+00 : f32
    %283 = vector.broadcast %cst_150 : f32 to vector<16x16xf32>
    %284 = arith.subf %283, %282 : vector<16x16xf32>
    %285 = vector.shape_cast %284 : vector<16x16xf32> to vector<1x16x16xf32>
    %cst_151 = arith.constant dense<0.000000e+00> : vector<1xf32>
    %286 = vector.multi_reduction <add>, %285, %cst_151 [1, 2] : vector<1x16x16xf32> to vector<1xf32>
    %287 = vector.shape_cast %286 : vector<1xf32> to vector<1x1x1xf32>
    %288 = vector.extract %287[0, 0, 0] : f32 from vector<1x1x1xf32>
    %cst_152 = arith.constant 2.560000e+02 : f32
    %289 = arith.divf %288, %cst_152 : f32
    %290 = vector.broadcast %289 : f32 to vector<1x1xf32>
    %c0_153 = arith.constant 0 : index
    %c3_154 = arith.constant 3 : index
    %c0_155 = arith.constant 0 : index
    %c0_156 = arith.constant 0 : index
    %291 = vector.load %arg5[%c0_153, %c3_154, %c0_155, %c0_156] : memref<1x4x1x1xf32, #tpu.memory_space<vmem>>, vector<1x1x1x1xf32>
    %292 = vector.shape_cast %291 : vector<1x1x1x1xf32> to vector<1x1xf32>
    %293 = vector.shape_cast %290 : vector<1x1xf32> to vector<1x1x1x1xf32>
    tpu.vector_store %arg5[%c0_153, %c3_154, %c0_155, %c0_156], %293 {strides = array<i32>} : memref<1x4x1x1xf32, #tpu.memory_space<vmem>>, vector<1x1x1x1xf32>,
    return
  }
  func.func @transform_0(%arg0: i32) -> (i32, i32) {
    %c0_i32 = arith.constant 0 : i32
    %c0_i32_0 = arith.constant 0 : i32
    %c0_i32_1 = arith.constant 0 : i32
    return %c0_i32, %c0_i32_0 : i32, i32
  }
  func.func @transform_1(%arg0: i32) -> (i32, i32) {
    %c0_i32 = arith.constant 0 : i32
    %c0_i32_0 = arith.constant 0 : i32
    %c0_i32_1 = arith.constant 0 : i32
    return %c0_i32, %c0_i32_0 : i32, i32
  }
  func.func @transform_2(%arg0: i32) -> (i32, i32, i32, i32) {
    %c0_i32 = arith.constant 0 : i32
    %c0_i32_0 = arith.constant 0 : i32
    %c0_i32_1 = arith.constant 0 : i32
    %c0_i32_2 = arith.constant 0 : i32
    return %arg0, %c0_i32, %c0_i32_0, %c0_i32_1 : i32, i32, i32, i32
  }
  func.func @transform_3(%arg0: i32) -> (i32, i32, i32, i32) {
    %c0_i32 = arith.constant 0 : i32
    %c0_i32_0 = arith.constant 0 : i32
    %c0_i32_1 = arith.constant 0 : i32
    %c0_i32_2 = arith.constant 0 : i32
    return %arg0, %c0_i32, %c0_i32_0, %c0_i32_1 : i32, i32, i32, i32
  }
  func.func @transform_4(%arg0: i32) -> (i32, i32, i32, i32) {
    %c0_i32 = arith.constant 0 : i32
    %c0_i32_0 = arith.constant 0 : i32
    %c0_i32_1 = arith.constant 0 : i32
    %c0_i32_2 = arith.constant 0 : i32
    return %arg0, %c0_i32, %c0_i32_0, %c0_i32_1 : i32, i32, i32, i32
  }
}

</mosaic_0001>

<bundles_post_ra>
// kernel: d_rho.1
= control target key start
LH: loop header
LB: loop body
LE: loop exit
PB: predicated region body
PF: predicated region fallthrough
CT: control target
= control target key end

     0   :  { %9 = vsyncpa [#allocation3], 0  ;;  %s3542_s0 = inlined_call_operand.vmem [shape: f32[16,16], index: 0, kind: input, shape index: {}]   ;;  %s3543_s1 = inlined_call_operand.vmem [shape: f32[16,16], index: 1, kind: input, shape index: {}]   ;;  %s3544_s2 = inlined_call_operand.hbm [shape: f32[2,4,16,16], index: 2, kind: input, shape index: {}]   ;;  %s3545_s3 = inlined_call_operand.hbm [shape: f32[2,3,16,16], index: 3, kind: input, shape index: {}]   ;;  %s3546_s4 = inlined_call_operand.vmem [shape: f32[2,4,1,1], index: 4, kind: output, shape index: {}]  }
   0x1   :  { %11 = vsyncpa [#allocation3 + $0x1], 0 }
   0x2   :  { %12 = vsyncpa [#allocation5], 0 }
   0x3   :  { %14 = vsyncpa [#allocation5 + $0x1], 0  ;;  %s2782_s15 = smov 0   ;;  %s2784_s16 = smov 0  }
   0x4   :  { %s2786_s17 = smov 0   ;;  %s2788_s18 = smov 0  }
   0x5 LB: > { %s2801_s19 = sadd.s32 4294967295, %s2752_s18   ;;  %s2804_s20 = sadd.s32 1, %s2752_s18   ;;  %s2752_s18 = sphi %s2788_s18, %s3554_s18   ;;  %s2748_s17 = sphi %s2786_s17, %s3553_s17   ;;  %s2744_s16 = sphi %s2784_s16, %s3552_s16   ;;  %s2740_s15 = sphi %s2782_s15, %s3551_s15  }
   0x6   : > { %s66_s21 = ssub.s32 %s2752_s18, %s2804_s20  ;;  %s69_s22 = sadd.s32 1, %s2748_s17 }
   0x7   : > { %p67_p0 = scmp.eq.s32.totalorder %s66_s21, 0  ;;  %p76_p1 = scmp.ne.s32.totalorder %s2748_s17, %s2744_s16 }
   0x8   : > { %p77_p2 = scmp.eq.s32.totalorder %s2752_s18, 0  ;;  %p82_p3 = scmp.ne.s32.totalorder %s2744_s16, %s2740_s15 }
   0x9   : > { %s2814_s23 = scalar_select %p67_p0, %s2748_s17, %s69_s22  }
   0xa   : > { %p2816_p4 = por %p77_p2, %p76_p1  ;;  %p83_p5 = scmp.eq.s32.totalorder %s2801_s19, 0 }
   0xb   : > { %p2516_p6 = scmp.lt.s32.totalorder %s2752_s18, 2  ;;  %s2827_s26 = sand.u32 1, %s2748_s17  }
   0xc   : > { %p2822_p7 = por %p83_p5, %p82_p3  ;;  %s2357_s27 = sshll.u32 %s2827_s26, 6 }
   0xd   : > { %s2491_s28 = sshll.u32 %s2752_s18, 6  ;;  %s168_s6 = scalar_lea.vmem [#allocation2], %s2357_s27 }
   0xe   : > { %s173_s5 = scalar_lea.hbm %s3544_s2, %s2491_s28  ;;  %s176_s7 = sshll.u32 %s168_s6, 4  ;;  %s177_s7 = int_to_ptr.vmem [resolvable:$true] %s176_s7 }
   0xf   : > { %s174_s8 = sshll.u32 %s173_s5, 4  ;;  %p2836_p8 = pnand %p2516_p6, %p2816_p4  ;;  %s175_s8 = int_to_ptr.hbm [resolvable:$true] %s174_s8 }
  0x10   : > { %p2361_p9 = scmp.ge.s32.totalorder %s2752_s18, 1  ;;  %s165_s10 = scalar_lea.sflag [#allocation3], %s2827_s26 }
  0x11   : > { %s2654_s11 = sshra.s32 %s175_s8, 4  ;;  %p2658_p11 = pneg %p2836_p8  ;;  %s2655_s11 = int_to_ptr.hbm [resolvable:$true] %s2654_s11 }
  0x12   : > { %s2656_s12 = scalar_lea.hbm %s2655_s11, 64  ;;  %s2661_s15 = scalar_lea.hbm %s3544_s2, 128 }
  0x13   : > { %p2657_p10 = scmp.ne.s32.totalorder %s2655_s11, %s2656_s12  ;;  %p2662_p0 = scmp.lt.s32.totalorder %s2655_s11, %s3544_s2 }
  0x14   : > { %p2663_p1 = scmp.lt.s32.totalorder %s2661_s15, %s2656_s12 }
  0x15   : > { %p2659_p12 = pnand %p2658_p11, %p2657_p10 }
  0x16   : > { %p2664_p2 = por %p2663_p1, %p2662_p0 }
  0x17   : > { %p2660_p13 = pneg %p2659_p12 }
  0x19   : > { %p2665_p3 = pnand %p2664_p2, %p2660_p13 }
  0x1b   : > { %2668 = shalt.err (!%p2665_p3)
}
  0x1c   : > { %s2754_s24 = smov 128   ;;  %s2755_s27 = smov 8  }
  0x1d   : > { %2512 = dma.hbm_to_vmem [thread:$0]  (!%p2836_p8), %s175_s8, 1024, %s177_s7, %s165_s10, %s2754_s24, %s2754_s24, %s2755_s27  }
  0x1e   : > { %p206_p4 = scmp.lt.s32.totalorder %s2752_s18, 3  ;;  %s2492_s28 = smul.u32 48, %s2827_s26 }
  0x1f   : > { %s2493_s30 = smul.u32 48, %s2752_s18  ;;  %s187_s15 = scalar_lea.sflag [#allocation5], %s2827_s26 }
  0x20   : > { %p2862_p5 = pnand %p2361_p9, %p206_p4  ;;  %s190_s12 = scalar_lea.vmem [#allocation4], %s2492_s28 }
  0x21   : > { %s195_s11 = scalar_lea.hbm %s3545_s3, %s2493_s30  ;;  %s198_s13 = sshll.u32 %s190_s12, 4  ;;  %s199_s13 = int_to_ptr.vmem [resolvable:$true] %s198_s13 }
  0x22   : > { %s196_s14 = sshll.u32 %s195_s11, 4  ;;  %s2691_s21 = scalar_lea.hbm %s3545_s3, 96  ;;  %s197_s14 = int_to_ptr.hbm [resolvable:$true] %s196_s14 }
  0x23   : > { %s2684_s7 = sshra.s32 %s197_s14, 4  ;;  %s2685_s7 = int_to_ptr.hbm [resolvable:$true] %s2684_s7 }
  0x24   : > { %s2686_s8 = scalar_lea.hbm %s2685_s7, 48  ;;  %p2692_p12 = scmp.lt.s32.totalorder %s2685_s7, %s3545_s3 }
  0x25   : > { %p2687_p6 = scmp.ne.s32.totalorder %s2685_s7, %s2686_s8  ;;  %p2693_p13 = scmp.lt.s32.totalorder %s2691_s21, %s2686_s8 }
  0x27   : > { %p2689_p9 = pnand %p2687_p6, %p2658_p11  ;;  %p2694_p0 = por %p2693_p13, %p2692_p12 }
  0x29   : > { %p2690_p10 = pneg %p2689_p9 }
  0x2b   : > { %p2695_p1 = pnand %p2694_p0, %p2690_p10 }
  0x2d   : > { %2698 = shalt.err (!%p2695_p1)
}
  0x2e   : > { %2515 = dma.hbm_to_vmem [thread:$0]  (!%p2836_p8), %s197_s14, 768, %s199_s13, %s187_s15, %s2754_s24, %s2754_s24, %s2755_s27  }
  0x2f   : > { %210 = sbr.rel (%p2862_p5) target bundleno = 1797 (0x705), region = 36  ;;  %s212_s26 = sand.u32 (!%p2862_p5), 1, %s2744_s16  }
  0x30   : > { %s2362_s28 = sshll.u32 (!%p2862_p5), %s212_s26, 6  ;;  %s213_s5 = scalar_lea.sflag (!%p2862_p5), [#allocation3], %s212_s26 }
  0x31   : > { %s2888_s6 = scalar_lea.vmem (!%p2862_p5), [#allocation2], %s2362_s28 }
  0x34   : > { %2731 = dma.done.wait (%p2822_p7), %s213_s5, 1024  }
  0x35   : > { %2733 = vsyncadd (%p2822_p7), %s213_s5, 4294966272  ;;  %s2494_s9 = smul.u32 48, %s212_s26  ;;  %s223_s11 = scalar_lea.sflag [#allocation5], %s212_s26 }
  0x37   : > { %s226_s12 = scalar_lea.vmem [#allocation4], %s2494_s9 }
  0x38   : > { %2735 = dma.done.wait (%p2822_p7), %s223_s11, 768  }
  0x39   : > { %2737 = vsyncadd (%p2822_p7), %s223_s11, 4294966528  ;;  %v2898_v0 = vld [vmem:[%s226_s12 + $0x8] sm:$0xff]  ;;  %v2900_v1 = vld [vmem:[%s226_s12] sm:$0xff]  ;;  %vm266_vm0 = vcmask 130048   ;;  %p256_p7 = scmp.lt.s32.totalorder %s2801_s19, 1  ;;  %vm1025_vm14 = vcmask 0  }
  0x3a   : > { %287 = vmatpush.msra.mxu0 %v2898_v0  ;;  %v2906_v2 = vld [vmem:[%s3542_s0] sm:$0xff]  ;;  %v2908_v3 = vld [vmem:[%s226_s12 + $0x18] sm:$0xff]  ;;  %v2916_v5 = vld [vmem:[%s226_s12 + $0x28] sm:$0xff] }
  0x3b   : > { %v2913_v4 = vld [vmem:[%s226_s12 + $0x10] sm:$0xff]  ;;  %v2919_v6 = vld [vmem:[%s226_s12 + $0x20] sm:$0xff]  ;;  %v2925_v7 = vld [vmem:[%s3542_s0 + $0x8] sm:$0xff]  ;;  %s3556_s19 = smov (!%p256_p7, %s2801_s19), 1 }
  0x3c   : > { %288 = vmatpush.msra.mxu0 %v2900_v1  ;;  %v2931_v8 = vld [vmem:[%s2888_s6 + $0x8] sm:$0xff]  ;;  %v2936_v9 = vld [vmem:[%s2888_s6] sm:$0xff]  ;;  %v3037_v58 = vld [vmem:[%s2888_s6 + $0x18] sm:$0xff]  ;;  %s2363_s8 = sshll.u32 %s3556_s19, 2 }
  0x3d   : > { %2364 = vmatmul.msk.f32.vlgmr.msra.gmra.mxu0 %vm266_vm0, %v2906_v2  ;;  %v2945_v10 = vld [vmem:[%s3543_s1 + $0x8] sm:$0xff]  ;;  %v2960_v11 = vld [vmem:[%s3543_s1] sm:$0xff]  ;;  %v3042_v59 = vld [vmem:[%s2888_s6 + $0x10] sm:$0xff]  ;;  %s3239_s26 = scalar_lea.vmem %s3546_s4, %s2363_s8 }
  0x3e   : > { %402 = vmatpush.msrb.mxu0 %v2908_v3  ;;  %316 = vmatpush.msra.mxu1 %v2945_v10 }
  0x3f   : > { %374 = vmatpush.msra.mxu3 %v2945_v10 }
  0x40   : > { %403 = vmatpush.msrb.mxu0 %v2913_v4  ;;  %317 = vmatpush.msra.mxu1 %v2960_v11 }
  0x41   : > { %375 = vmatpush.msra.mxu3 %v2960_v11 }
  0x42   : > { %517 = vmatpush.msra.mxu0 %v2916_v5  ;;  %431 = vmatpush.msrb.mxu1 %v2945_v10 }
  0x43   : > { %489 = vmatpush.msrb.mxu3 %v2945_v10 }
  0x44   : > { %518 = vmatpush.msra.mxu0 %v2919_v6  ;;  %432 = vmatpush.msrb.mxu1 %v2960_v11 }
  0x45   : > { %2365 = vmatmul.msk.f32.gmra.mxu0 %vm266_vm0, %v2925_v7  ;;  %490 = vmatpush.msrb.mxu3 %v2960_v11 }
  0x4d   : > { %2374 = vmatmul.msk.f32.vlgmr.msrb.gmra.mxu0 %vm266_vm0, %v2906_v2 }
  0x4e   : > { %631 = vmatpush.msrb.mxu0 %v2931_v8 }
  0x50   : > { %632 = vmatpush.msrb.mxu0 %v2936_v9 }
  0x55   : > { %2375 = vmatmul.msk.f32.gmra.mxu0 %vm266_vm0, %v2925_v7 }
  0x5d   : > { %2384 = vmatmul.msk.f32.vlgmr.msra.gmra.mxu0 %vm266_vm0, %v2906_v2 }
  0x65   : > { %2385 = vmatmul.msk.f32.gmra.mxu0 %vm266_vm0, %v2925_v7 }
  0x6d   : > { %2392 = vmatmul.msk.f32.vlgmr.msrb.gmra.mxu0 %vm266_vm0, %v2906_v2 }
  0x75   : > { %2393 = vmatmul.msk.f32.gmra.mxu0 %vm266_vm0, %v2925_v7 }
  0xba   : > { %v290_v12 = vpop.f32.mrf.mxu0 }
  0xbb   : > { %2366 = vmatmul.msk.f32.vlgmr.msra.gmra.mxu1 %vm266_vm0, %v290_v12 }
  0xbc   : > { %546 = vmatpush.msra.mxu1 %v2945_v10 }
  0xbe   : > { %547 = vmatpush.msra.mxu1 %v2960_v11 }
  0xc2   : > { %v293_v13 = vpop.f32.mrf.mxu0 }
  0xc3   : > { %2367 = vmatmul.msk.f32.gmra.mxu1 %vm266_vm0, %v293_v13 }
  0xca   : > { %v405_v14 = vpop.f32.mrf.mxu0 }
  0xcb   : > { %2376 = vmatmul.msk.f32.vlgmr.msrb.gmra.mxu1 %vm266_vm0, %v405_v14 }
  0xcc   : > { %660 = vmatpush.msrb.mxu1 %v2945_v10 }
  0xce   : > { %661 = vmatpush.msrb.mxu1 %v2960_v11 }
  0xd2   : > { %v408_v15 = vpop.f32.mrf.mxu0 }
  0xd3   : > { %2377 = vmatmul.msk.f32.gmra.mxu1 %vm266_vm0, %v408_v15 }
  0xda   : > { %v520_v16 = vpop.f32.mrf.mxu0 }
  0xdb   : > { %2386 = vmatmul.msk.f32.vlgmr.msra.gmra.mxu1 %vm266_vm0, %v520_v16 }
  0xdc   : > { %774 = vmatpush.msra.mxu1 %v2945_v10 }
  0xde   : > { %775 = vmatpush.msra.mxu1 %v2960_v11 }
  0xe2   : > { %v523_v17 = vpop.f32.mrf.mxu0 }
  0xe3   : > { %2387 = vmatmul.msk.f32.gmra.mxu1 %vm266_vm0, %v523_v17 }
  0xea   : > { %v634_v18 = vpop.f32.mrf.mxu0 }
  0xeb   : > { %2394 = vmatmul.msk.f32.vlgmr.msrb.gmra.mxu1 %vm266_vm0, %v634_v18 }
  0xec   : > { %952 = vmatpush.msrb.mxu1 %v2945_v10 }
  0xee   : > { %953 = vmatpush.msrb.mxu1 %v2960_v11 }
  0xf2   : > { %v637_v19 = vpop.f32.mrf.mxu0 }
  0xf3   : > { %2395 = vmatmul.msk.f32.gmra.mxu1 %vm266_vm0, %v637_v19 }
 0x138   : > { %v319_v20 = vpop.f32.mrf.mxu1 }
 0x139   : > { %v325_v21 = vmul.f32 0.0625, %v319_v20 }
 0x13b   : > { %v2985_v24 = vsub.f32 %v2900_v1, %v325_v21 }
 0x13d   : > { %v329_v27 = vmul.f32 %v2985_v24, %v2985_v24 }
 0x140   : > { %v322_v22 = vpop.f32.mrf.mxu1 }
 0x141   : > { %v326_v23 = vmul.f32 0.0625, %v322_v22 }
 0x143   : > { %v2988_v25 = vsub.f32 %v2898_v0, %v326_v23 }
 0x145   : > { %v330_v26 = vmul.f32 %v2988_v25, %v2988_v25 }
 0x147   : > { %345 = vmatpush.msra.mxu2 %v330_v26 }
 0x148   : > { %v434_v28 = vpop.f32.mrf.mxu1 }
 0x149   : > { %346 = vmatpush.msra.mxu2 %v329_v27  ;;  %v440_v29 = vmul.f32 0.0625, %v434_v28 }
 0x14a   : > { %2368 = vmatmul.msk.f32.vlgmr.msra.gmra.mxu2 %vm266_vm0, %v2906_v2 }
 0x14b   : > { %v2999_v32 = vsub.f32 %v2913_v4, %v440_v29 }
 0x14d   : > { %v444_v35 = vmul.f32 %v2999_v32, %v2999_v32 }
 0x150   : > { %v437_v30 = vpop.f32.mrf.mxu1 }
 0x151   : > { %v441_v31 = vmul.f32 0.0625, %v437_v30 }
 0x152   : > { %2369 = vmatmul.msk.f32.gmra.mxu2 %vm266_vm0, %v2925_v7 }
 0x153   : > { %v3002_v33 = vsub.f32 %v2908_v3, %v441_v31 }
 0x155   : > { %v445_v34 = vmul.f32 %v3002_v33, %v3002_v33 }
 0x157   : > { %460 = vmatpush.msrb.mxu2 %v445_v34 }
 0x158   : > { %v549_v36 = vpop.f32.mrf.mxu1 }
 0x159   : > { %461 = vmatpush.msrb.mxu2 %v444_v35  ;;  %v555_v37 = vmul.f32 0.0625, %v549_v36 }
 0x15a   : > { %2378 = vmatmul.msk.f32.vlgmr.msrb.gmra.mxu2 %vm266_vm0, %v2906_v2 }
 0x15b   : > { %v3013_v40 = vsub.f32 %v2919_v6, %v555_v37 }
 0x15d   : > { %v559_v43 = vmul.f32 %v3013_v40, %v3013_v40 }
 0x160   : > { %v552_v38 = vpop.f32.mrf.mxu1 }
 0x161   : > { %v556_v39 = vmul.f32 0.0625, %v552_v38 }
 0x162   : > { %2379 = vmatmul.msk.f32.gmra.mxu2 %vm266_vm0, %v2925_v7 }
 0x163   : > { %v3016_v41 = vsub.f32 %v2916_v5, %v556_v39 }
 0x165   : > { %v560_v42 = vmul.f32 %v3016_v41, %v3016_v41 }
 0x167   : > { %575 = vmatpush.msra.mxu2 %v560_v42 }
 0x168   : > { %v663_v44 = vpop.f32.mrf.mxu1 }
 0x169   : > { %576 = vmatpush.msra.mxu2 %v559_v43  ;;  %v669_v45 = vmul.f32 0.0625, %v663_v44 }
 0x16a   : > { %2388 = vmatmul.msk.f32.vlgmr.msra.gmra.mxu2 %vm266_vm0, %v2906_v2 }
 0x16b   : > { %v671_v48 = vsub.f32 %v2936_v9, %v669_v45 }
 0x16d   : > { %v673_v52 = vmul.f32 %v671_v48, %v671_v48  ;;  %v729_v53 = vmul.f32 %v671_v48, %v2985_v24  ;;  %v907_v56 = vmul.f32 %v671_v48, %v3013_v40  ;;  %v817_v57 = vmul.f32 %v671_v48, %v2999_v32 }
 0x170   : > { %v666_v46 = vpop.f32.mrf.mxu1 }
 0x171   : > { %v670_v47 = vmul.f32 0.0625, %v666_v46 }
 0x172   : > { %2389 = vmatmul.msk.f32.gmra.mxu2 %vm266_vm0, %v2925_v7 }
 0x173   : > { %v672_v49 = vsub.f32 %v2931_v8, %v670_v47 }
 0x175   : > { %v674_v50 = vmul.f32 %v672_v49, %v672_v49  ;;  %v730_v51 = vmul.f32 %v672_v49, %v2988_v25  ;;  %v908_v54 = vmul.f32 %v672_v49, %v3016_v41  ;;  %v818_v55 = vmul.f32 %v672_v49, %v3002_v33 }
 0x177   : > { %689 = vmatpush.msrb.mxu2 %v674_v50  ;;  %745 = vmatpush.msra.mxu0 %v730_v51 }
 0x179   : > { %690 = vmatpush.msrb.mxu2 %v673_v52  ;;  %746 = vmatpush.msra.mxu0 %v729_v53 }
 0x17a   : > { %2396 = vmatmul.msk.f32.vlgmr.msrb.gmra.mxu2 %vm266_vm0, %v2906_v2  ;;  %2400 = vmatmul.msk.f32.vlgmr.msra.gmra.mxu0 %vm266_vm0, %v2906_v2 }
 0x17b   : > { %923 = vmatpush.msrb.mxu0 %v908_v54  ;;  %833 = vmatpush.msra.mxu2 %v818_v55 }
 0x17d   : > { %924 = vmatpush.msrb.mxu0 %v907_v56  ;;  %834 = vmatpush.msra.mxu2 %v817_v57 }
 0x17f   : > { %1044 = vmatpush.msrb.mxu2 %v3037_v58 }
 0x181   : > { %1045 = vmatpush.msrb.mxu2 %v3042_v59 }
 0x182   : > { %2397 = vmatmul.msk.f32.gmra.mxu2 %vm266_vm0, %v2925_v7  ;;  %2401 = vmatmul.msk.f32.gmra.mxu0 %vm266_vm0, %v2925_v7 }
 0x18a   : > { %2404 = vmatmul.msk.f32.vlgmr.msra.gmra.mxu2 %vm266_vm0, %v2906_v2  ;;  %2408 = vmatmul.msk.f32.vlgmr.msrb.gmra.mxu0 %vm266_vm0, %v2906_v2 }
 0x192   : > { %2405 = vmatmul.msk.f32.gmra.mxu2 %vm266_vm0, %v2925_v7  ;;  %2409 = vmatmul.msk.f32.gmra.mxu0 %vm266_vm0, %v2925_v7 }
 0x19a   : > { %2416 = vmatmul.msk.f32.vlgmr.msrb.gmra.mxu2 %vm266_vm0, %v2906_v2 }
 0x1a2   : > { %2417 = vmatmul.msk.f32.gmra.mxu2 %vm266_vm0, %v2925_v7 }
 0x1cd   : > { %v348_v60 = vpop.f32.mrf.mxu2 }
 0x1ce   : > { %2370 = vmatmul.msk.f32.vlgmr.msra.gmra.mxu3 %vm266_vm0, %v348_v60 }
 0x1cf   : > { %604 = vmatpush.msra.mxu3 %v2945_v10 }
 0x1d1   : > { %605 = vmatpush.msra.mxu3 %v2960_v11 }
 0x1d5   : > { %v351_v61 = vpop.f32.mrf.mxu2 }
 0x1d6   : > { %2371 = vmatmul.msk.f32.gmra.mxu3 %vm266_vm0, %v351_v61 }
 0x1dd   : > { %v463_v62 = vpop.f32.mrf.mxu2 }
 0x1de   : > { %2380 = vmatmul.msk.f32.vlgmr.msrb.gmra.mxu3 %vm266_vm0, %v463_v62 }
 0x1df   : > { %718 = vmatpush.msrb.mxu3 %v2945_v10 }
 0x1e1   : > { %719 = vmatpush.msrb.mxu3 %v2960_v11 }
 0x1e5   : > { %v466_v63 = vpop.f32.mrf.mxu2 }
 0x1e6   : > { %2381 = vmatmul.msk.f32.gmra.mxu3 %vm266_vm0, %v466_v63 }
 0x1ed   : > { %v578_v0 = vpop.f32.mrf.mxu2 }
 0x1ee   : > { %2390 = vmatmul.msk.f32.vlgmr.msra.gmra.mxu3 %vm266_vm0, %v578_v0 }
 0x1ef   : > { %862 = vmatpush.msra.mxu3 %v2945_v10 }
 0x1f1   : > { %863 = vmatpush.msra.mxu3 %v2960_v11 }
 0x1f5   : > { %v581_v1 = vpop.f32.mrf.mxu2 }
 0x1f6   : > { %2391 = vmatmul.msk.f32.gmra.mxu3 %vm266_vm0, %v581_v1 }
 0x1f7   : > { %v748_v3 = vpop.f32.mrf.mxu0 }
 0x1f8   : > { %2402 = vmatmul.msk.f32.vlgmr.msra.gmra.mxu1 %vm266_vm0, %v748_v3 }
 0x1f9   : > { %1131 = vmatpush.msra.mxu1 %v2945_v10 }
 0x1fb   : > { %1132 = vmatpush.msra.mxu1 %v2960_v11 }
 0x1fd   : > { %v692_v4 = vpop.f32.mrf.mxu2 }
 0x1fe   : > { %2398 = vmatmul.msk.f32.vlgmr.msrb.gmra.mxu3 %vm266_vm0, %v692_v4 }
 0x1ff   : > { %1073 = vmatpush.msrb.mxu3 %v2945_v10  ;;  %v751_v5 = vpop.f32.mrf.mxu0 }
 0x200   : > { %2403 = vmatmul.msk.f32.gmra.mxu1 %vm266_vm0, %v751_v5 }
 0x201   : > { %1074 = vmatpush.msrb.mxu3 %v2960_v11 }
 0x205   : > { %v695_v6 = vpop.f32.mrf.mxu2 }
 0x206   : > { %2399 = vmatmul.msk.f32.gmra.mxu3 %vm266_vm0, %v695_v6 }
 0x207   : > { %v926_v8 = vpop.f32.mrf.mxu0 }
 0x208   : > { %2410 = vmatmul.msk.f32.vlgmr.msrb.gmra.mxu1 %vm266_vm0, %v926_v8 }
 0x209   : > { %1275 = vmatpush.msrb.mxu1 %v2945_v10 }
 0x20b   : > { %1276 = vmatpush.msrb.mxu1 %v2960_v11 }
 0x20d   : > { %v836_v9 = vpop.f32.mrf.mxu2 }
 0x20e   : > { %2406 = vmatmul.msk.f32.vlgmr.msra.gmra.mxu3 %vm266_vm0, %v836_v9 }
 0x20f   : > { %1187 = vmatpush.msra.mxu3 %v2945_v10  ;;  %v929_v12 = vpop.f32.mrf.mxu0 }
 0x210   : > { %2411 = vmatmul.msk.f32.gmra.mxu1 %vm266_vm0, %v929_v12 }
 0x211   : > { %1188 = vmatpush.msra.mxu3 %v2960_v11 }
 0x215   : > { %v839_v13 = vpop.f32.mrf.mxu2 }
 0x216   : > { %2407 = vmatmul.msk.f32.gmra.mxu3 %vm266_vm0, %v839_v13 }
 0x21d   : > { %v1047_v14 = vpop.f32.mrf.mxu2 }
 0x21e   : > { %2418 = vmatmul.msk.f32.vlgmr.msrb.gmra.mxu3 %vm266_vm0, %v1047_v14 }
 0x21f   : > { %1365 = vmatpush.msrb.mxu3 %v2945_v10 }
 0x221   : > { %1366 = vmatpush.msrb.mxu3 %v2960_v11 }
 0x225   : > { %v1050_v15 = vpop.f32.mrf.mxu2 }
 0x226   : > { %2419 = vmatmul.msk.f32.gmra.mxu3 %vm266_vm0, %v1050_v15 }
 0x251   : > { %v377_v16 = vpop.f32.mrf.mxu3 }
 0x252   : > { %v3094_v22 = vmax.f32 %v377_v16, 1e-20 }
 0x259   : > { %v380_v17 = vpop.f32.mrf.mxu3 }
 0x25a   : > { %v3109_v34 = vmax.f32 %v380_v17, 1e-20 }
 0x261   : > { %v492_v18 = vpop.f32.mrf.mxu3 }
 0x262   : > { %v3096_v26 = vmax.f32 %v492_v18, 1e-20 }
 0x269   : > { %v495_v19 = vpop.f32.mrf.mxu3 }
 0x26a   : > { %v3111_v36 = vmax.f32 %v495_v19, 1e-20 }
 0x271   : > { %v607_v20 = vpop.f32.mrf.mxu3 }
 0x272   : > { %v3098_v27 = vmax.f32 %v607_v20, 1e-20 }
 0x275   : > { %v3126_v49 = vpop.f32.mrf.mxu1 }
 0x279   : > { %v610_v21 = vpop.f32.mrf.mxu3 }
 0x27a   : > { %v3113_v37 = vmax.f32 %v610_v21, 1e-20 }
 0x27d   : > { %v3140_v17 = vpop.f32.mrf.mxu1 }
 0x281   : > { %v721_v23 = vpop.f32.mrf.mxu3 }
 0x282   : > { %v727_v28 = vmax.f32 %v721_v23, 1e-20 }
 0x284   : > { %v783_v29 = vmul.f32 %v727_v28, %v3094_v22  ;;  %v3102_v30 = vmul.f32 %v727_v28, %v3096_v26  ;;  %v3105_v31 = vmul.f32 %v727_v28, %v3098_v27 }
 0x286   : > { %2552 = vrsqrt.f32 %v783_v29  ;;  %vm880_vm1 = vcmp.eq.f32.partialorder %v3102_v30, inf  ;;  %vm882_vm2 = vcmp.eq.f32.partialorder %v3102_v30, 0.0  ;;  %v883_v5 = vand.u32 2147483648, %v3102_v30 }
 0x287   : > { %2554 = vrsqrt.f32 %v3102_v30  ;;  %vm792_vm3 = vcmp.eq.f32.partialorder %v783_v29, inf  ;;  %vm794_vm4 = vcmp.eq.f32.partialorder %v783_v29, 0.0  ;;  %v795_v15 = vand.u32 2147483648, %v783_v29 }
 0x288   : > { %2556 = vrsqrt.f32 %v3105_v31  ;;  %vm970_vm5 = vcmp.eq.f32.partialorder %v3105_v31, inf  ;;  %vm972_vm6 = vcmp.eq.f32.partialorder %v3105_v31, 0.0 }
 0x289   : > { %v724_v35 = vpop.f32.mrf.mxu3 }
 0x28a   : > { %v728_v38 = vmax.f32 %v724_v35, 1e-20 }
 0x28c   : > { %v2553_v39 = vpop.eup %2552  ;;  %v3116_v42 = vmul.f32 %v728_v38, %v3109_v34  ;;  %v3119_v43 = vmul.f32 %v728_v38, %v3111_v36  ;;  %v3122_v44 = vmul.f32 %v728_v38, %v3113_v37 }
 0x28d   : > { %v2555_v45 = vpop.eup %2554  ;;  %v786_v46 = vmul.f32 %v2553_v39, %v783_v29 }
 0x28e   : > { %v2557_v47 = vpop.eup %2556  ;;  %2558 = vrsqrt.f32 %v3116_v42  ;;  %v874_v48 = vmul.f32 %v2555_v45, %v3102_v30  ;;  %vm892_vm7 = vcmp.eq.f32.partialorder %v3119_v43, inf  ;;  %vm804_vm8 = vcmp.eq.f32.partialorder %v3116_v42, inf }
 0x28f   : > { %2560 = vrsqrt.f32 %v3119_v43  ;;  %v787_v50 = vmul.f32 %v2553_v39, %v786_v46  ;;  %v964_v54 = vmul.f32 %v2557_v47, %v3105_v31  ;;  %vm806_vm9 = vcmp.eq.f32.partialorder %v3116_v42, 0.0 }
 0x290   : > { %2562 = vrsqrt.f32 %v3122_v44  ;;  %v875_v51 = vmul.f32 %v2555_v45, %v874_v48  ;;  %vm894_vm10 = vcmp.eq.f32.partialorder %v3119_v43, 0.0  ;;  %vm982_vm11 = vcmp.eq.f32.partialorder %v3122_v44, inf }
 0x291   : > { %v3130_v52 = vpop.f32.mrf.mxu3  ;;  %v788_v53 = vmul.f32 0.5, %v787_v50  ;;  %v965_v57 = vmul.f32 %v2557_v47, %v964_v54  ;;  %vm984_vm12 = vcmp.eq.f32.partialorder %v3122_v44, 0.0 }
 0x292   : > { %v876_v55 = vmul.f32 0.5, %v875_v51 }
 0x293   : > { %v789_v56 = vsub.f32 1.5, %v788_v53  ;;  %v966_v1 = vmul.f32 0.5, %v965_v57 }
 0x294   : > { %v2559_v60 = vpop.eup %2558  ;;  %v877_v61 = vsub.f32 1.5, %v876_v55 }
 0x295   : > { %v2561_v62 = vpop.eup %2560  ;;  %v790_v63 = vmul.f32 %v2553_v39, %v789_v56  ;;  %v798_v0 = vmul.f32 %v2559_v60, %v3116_v42  ;;  %v967_v12 = vsub.f32 1.5, %v966_v1  ;;  %v895_v1 = vand.u32 2147483648, %v3119_v43 }
 0x296   : > { %v2563_v3 = vpop.eup %2562  ;;  %v878_v4 = vmul.f32 %v2555_v45, %v877_v61  ;;  %v886_v6 = vmul.f32 %v2561_v62, %v3119_v43 }
 0x297   : > { %v791_v8 = vmul.f32 %v790_v63, %v783_v29  ;;  %v799_v9 = vmul.f32 %v2559_v60, %v798_v0  ;;  %v976_v13 = vmul.f32 %v2563_v3, %v3122_v44  ;;  %v968_v21 = vmul.f32 %v2557_v47, %v967_v12 }
 0x298   : > { %v879_v14 = vmul.f32 %v878_v4, %v3102_v30  ;;  %v887_v16 = vmul.f32 %v2561_v62, %v886_v6  ;;  %v973_v47 = vand.u32 2147483648, %v3105_v31  ;;  %v807_v0 = vand.u32 2147483648, %v3116_v42  ;;  %v955_v6 = vpop.f32.mrf.mxu1 }
 0x299   : > { %v793_v18 = vsel %vm792_vm3, %v783_v29, %v791_v8  ;;  %v3142_v19 = vpop.f32.mrf.mxu3  ;;  %v800_v20 = vmul.f32 0.5, %v799_v9  ;;  %v977_v23 = vmul.f32 %v2563_v3, %v976_v13  ;;  %v969_v29 = vmul.f32 %v968_v21, %v3105_v31 }
 0x29a   : > { %v881_v28 = vsel %vm880_vm1, %v3102_v30, %v879_v14  ;;  %v796_v35 = vsel %vm794_vm4, %v795_v15, %v793_v18  ;;  %v888_v38 = vmul.f32 0.5, %v887_v16 }
 0x29b   : > { %v884_v39 = vsel %vm882_vm2, %v883_v5, %v881_v28  ;;  %v809_v45 = vadd.f32 1e-20, %v796_v35  ;;  %v801_v46 = vsub.f32 1.5, %v800_v20  ;;  %v978_v51 = vmul.f32 0.5, %v977_v23 }
 0x29c   : > { %v897_v48 = vadd.f32 1e-20, %v884_v39  ;;  %v889_v50 = vsub.f32 1.5, %v888_v38  ;;  %v971_v54 = vsel %vm970_vm5, %v3105_v31, %v969_v29 }
 0x29d   : > { %2564 = vrcp.f32 %v809_v45  ;;  %v802_v53 = vmul.f32 %v2559_v60, %v801_v46  ;;  %v974_v56 = vsel %vm972_vm6, %v973_v47, %v971_v54  ;;  %v979_v30 = vsub.f32 1.5, %v978_v51 }
 0x29e   : > { %2566 = vrcp.f32 %v897_v48  ;;  %v890_v55 = vmul.f32 %v2561_v62, %v889_v50  ;;  %v987_v61 = vadd.f32 1e-20, %v974_v56 }
 0x29f   : > { %v803_v57 = vmul.f32 %v802_v53, %v3116_v42  ;;  %v980_v60 = vmul.f32 %v2563_v3, %v979_v30  ;;  %v985_v3 = vand.u32 2147483648, %v3122_v44 }
 0x2a0   : > { %v891_v63 = vmul.f32 %v890_v55, %v3119_v43  ;;  %2568 = vrcp.f32 %v987_v61  ;;  %v958_v47 = vpop.f32.mrf.mxu1 }
 0x2a1   : > { %v805_v31 = vsel %vm804_vm8, %v3116_v42, %v803_v57  ;;  %v1076_v62 = vpop.f32.mrf.mxu3  ;;  %v981_v8 = vmul.f32 %v980_v60, %v3122_v44 }
 0x2a2   : > { %v893_v4 = vsel %vm892_vm7, %v3119_v43, %v891_v63  ;;  %v808_v5 = vsel %vm806_vm9, %v807_v0, %v805_v31  ;;  %v1082_v35 = vmul.f32 0.0625, %v1076_v62 }
 0x2a3   : > { %v2565_v9 = vpop.eup %2564  ;;  %v896_v12 = vsel %vm894_vm10, %v895_v1, %v893_v4  ;;  %v810_v13 = vadd.f32 1e-20, %v808_v5  ;;  %v983_v16 = vsel %vm982_vm11, %v3122_v44, %v981_v8  ;;  %v3186_v4 = vld [vmem:[%s2888_s6 + $0x28] sm:$0xff]  ;;  %v3189_v8 = vld [vmem:[%s2888_s6 + $0x20] sm:$0xff] }
 0x2a4   : > { %v2567_v14 = vpop.eup %2566  ;;  %v813_v42 = vmul.f32 %v2565_v9, %v3126_v49  ;;  %v898_v15 = vadd.f32 1e-20, %v896_v12  ;;  %v986_v18 = vsel %vm984_vm12, %v985_v3, %v983_v16 }
 0x2a5   : > { %v901_v43 = vmul.f32 %v2567_v14, %v3130_v52  ;;  %2570 = vrcp.f32 %v810_v13  ;;  %v988_v21 = vadd.f32 1e-20, %v986_v18  ;;  %v1084_v52 = vsub.f32 %v3042_v59, %v1082_v35 }
 0x2a6   : > { %v815_v20 = vmax.f32 %v813_v42, -1.0  ;;  %2572 = vrcp.f32 %v898_v15  ;;  %v2569_v23 = vpop.eup %2568  ;;  %v2756_v14 = vmov 256.0  }
 0x2a7   : > { %v903_v28 = vmax.f32 %v901_v43, -1.0  ;;  %v991_v38 = vmul.f32 %v2569_v23, %v955_v6  ;;  %2574 = vrcp.f32 %v988_v21  ;;  %v1086_v63 = vmul.f32 %v1084_v52, %v1084_v52 }
 0x2a8   : > { %v1320_v31 = vmul.f32 %v1084_v52, %v3013_v40  ;;  %v1230_v62 = vmul.f32 %v1084_v52, %v2999_v32  ;;  %2576 = vrcp.f32 %v2756_v14 }
 0x2a9   : > { %v905_v39 = vmax.f32 %v815_v20, %v903_v28  ;;  %v1079_v45 = vpop.f32.mrf.mxu3  ;;  %v993_v29 = vmax.f32 %v991_v38, -1.0 }
 0x2aa   : > { %v1083_v49 = vmul.f32 0.0625, %v1079_v45 }
 0x2ab   : > { %v2571_v46 = vpop.eup %2570  ;;  %v995_v53 = vmax.f32 %v905_v39, %v993_v29 }
 0x2ac   : > { %v2573_v48 = vpop.eup %2572  ;;  %v814_v44 = vmul.f32 %v2571_v46, %v3140_v17  ;;  %v1085_v50 = vsub.f32 %v3037_v58, %v1083_v49  ;;  %v1142_v17 = vmul.f32 %v1084_v52, %v2985_v24 }
 0x2ad   : > { %v902_v51 = vmul.f32 %v2573_v48, %v3142_v19  ;;  %v2575_v54 = vpop.eup %2574  ;;  %v2412_v60 = vclamps-f32 %v995_v53, 1.0 }
 0x2ae   : > { %v816_v55 = vmax.f32 %v814_v44, -1.0  ;;  %v1087_v56 = vmul.f32 %v1085_v50, %v1085_v50  ;;  %v1143_v30 = vmul.f32 %v1085_v50, %v2988_v25  ;;  %v992_v61 = vmul.f32 %v2575_v54, %v958_v47  ;;  %v2577_v42 = vpop.eup %2576 }
 0x2af   : > { %v904_v57 = vmax.f32 %v902_v51, -1.0  ;;  %v1321_v58 = vmul.f32 %v1085_v50, %v3016_v41  ;;  %v1231_v19 = vmul.f32 %v1085_v50, %v3002_v33  ;;  %v1001_v6 = vsub.f32 1.0, %v2412_v60 }
 0x2b0   : > { %1102 = vmatpush.msra.mxu0 %v1087_v56  ;;  %1158 = vmatpush.msra.mxu2 %v1143_v30  ;;  %v994_v0 = vmax.f32 %v992_v61, -1.0  ;;  %v1016_v15 = vmul.f32 256.0, %v2577_v42  ;;  %vm1020_vm13 = vweird.f32 %v2577_v42 }
 0x2b1   : > { %v906_v59 = vmax.f32 %v816_v55, %v904_v57  ;;  %v1003_v12 = vsel %vm266_vm0, %v1001_v6, 0.0 }
 0x2b2   : > { %1103 = vmatpush.msra.mxu0 %v1086_v63  ;;  %1159 = vmatpush.msra.mxu2 %v1142_v17  ;;  %v1017_v16 = vsub.f32 1.0, %v1016_v15 }
 0x2b3   : > { %v996_v1 = vmax.f32 %v906_v59, %v994_v0  ;;  %2420 = vmatmul.msk.f32.vlgmr.msra.gmra.mxu0 %vm266_vm0, %v2906_v2  ;;  %2424 = vmatmul.msk.f32.vlgmr.msra.gmra.mxu2 %vm266_vm0, %v2906_v2 }
 0x2b4   : > { %1336 = vmatpush.msrb.mxu2 %v1321_v58  ;;  %1246 = vmatpush.msrb.mxu0 %v1231_v19  ;;  %v1018_v23 = vmul.f32 %v2577_v42, %v1017_v16 }
 0x2b5   : > { %v2413_v5 = vclamps-f32 %v996_v1, 1.0 }
 0x2b6   : > { %1337 = vmatpush.msrb.mxu2 %v1320_v31  ;;  %1247 = vmatpush.msrb.mxu0 %v1230_v62  ;;  %v1019_v35 = vadd.f32 %v2577_v42, %v1018_v23 }
 0x2b7   : > { %v1002_v9 = vsub.f32 1.0, %v2413_v5 }
 0x2b8   : > { %1457 = vmatpush.msra.mxu0 %v3186_v4  ;;  %v1021_v49 = vsel %vm1020_vm13, %v2577_v42, %v1019_v35 }
 0x2b9   : > { %v1004_v13 = vsel %vm266_vm0, %v1002_v9, 0.0 }
 0x2ba   : > { %1458 = vmatpush.msra.mxu0 %v3189_v8  ;;  %v1005_v3 = vadd.f32 %v1004_v13, %v1003_v12 }
 0x2bb   : > { %2421 = vmatmul.msk.f32.gmra.mxu0 %vm266_vm0, %v2925_v7  ;;  %2425 = vmatmul.msk.f32.gmra.mxu2 %vm266_vm0, %v2925_v7 }
 0x2bc   : > { %1006 = vadd.xlane.f32.xlu0 %v1005_v3 }
 0x2c3   : > { %2428 = vmatmul.msk.f32.vlgmr.msrb.gmra.mxu0 %vm266_vm0, %v2906_v2  ;;  %2432 = vmatmul.msk.f32.vlgmr.msrb.gmra.mxu2 %vm266_vm0, %v2906_v2 }
 0x2cb   : > { %2429 = vmatmul.msk.f32.gmra.mxu0 %vm266_vm0, %v2925_v7  ;;  %2433 = vmatmul.msk.f32.gmra.mxu2 %vm266_vm0, %v2925_v7 }
 0x2d3   : > { %2441 = vmatmul.msk.f32.vlgmr.msra.gmra.mxu0 %vm266_vm0, %v2906_v2 }
 0x2db   : > { %2442 = vmatmul.msk.f32.gmra.mxu0 %vm266_vm0, %v2925_v7 }
 0x32f   : > { %v1007_v43 = vpop.xlane.xlu0 %1006 }
 0x330   : > { %v1008_v18 = vrot.slane %v1007_v43, 4  ;;  %v1105_v20 = vpop.f32.mrf.mxu0 }
 0x331   : > { %2422 = vmatmul.msk.f32.vlgmr.msra.gmra.mxu1 %vm266_vm0, %v1105_v20 }
 0x332   : > { %v1009_v21 = vadd.f32 %v1008_v18, %v1007_v43  ;;  %1486 = vmatpush.msra.mxu1 %v2945_v10 }
 0x334   : > { %v1010_v28 = vrot.slane %v1009_v21, 2  ;;  %1487 = vmatpush.msra.mxu1 %v2960_v11 }
 0x336   : > { %v1011_v2 = vadd.f32 %v1010_v28, %v1009_v21  ;;  %v1161_v7 = vpop.f32.mrf.mxu2 }
 0x337   : > { %2426 = vmatmul.msk.f32.vlgmr.msra.gmra.mxu3 %vm266_vm0, %v1161_v7 }
 0x338   : > { %v1108_v38 = vpop.f32.mrf.mxu0  ;;  %v1012_v39 = vrot.slane %v1011_v2, 1  ;;  %1544 = vmatpush.msra.mxu3 %v2945_v10 }
 0x339   : > { %2423 = vmatmul.msk.f32.gmra.mxu1 %vm266_vm0, %v1108_v38 }
 0x33a   : > { %v1013_v45 = vadd.f32 %v1012_v39, %v1011_v2  ;;  %1545 = vmatpush.msra.mxu3 %v2960_v11 }
 0x33c   : > { %2495 = vpush %v1013_v45 }
 0x33d   : > { %2497 = vpush %v1021_v49 }
 0x33e   : > { %v1164_v46 = vpop.f32.mrf.mxu2 }
 0x33f   : > { %2427 = vmatmul.msk.f32.gmra.mxu3 %vm266_vm0, %v1164_v46 }
 0x340   : > { %v1249_v29 = vpop.f32.mrf.mxu0 }
 0x341   : > { %2430 = vmatmul.msk.f32.vlgmr.msrb.gmra.mxu1 %vm266_vm0, %v1249_v29 }
 0x342   : > { %1600 = vmatpush.msrb.mxu1 %v2945_v10 }
 0x344   : > { %1601 = vmatpush.msrb.mxu1 %v2960_v11 }
 0x346   : > { %v1339_v48 = vpop.f32.mrf.mxu2 }
 0x347   : > { %2434 = vmatmul.msk.f32.vlgmr.msrb.gmra.mxu3 %vm266_vm0, %v1339_v48 }
 0x348   : > { %v1252_v44 = vpop.f32.mrf.mxu0  ;;  %1688 = vmatpush.msrb.mxu3 %v2945_v10 }
 0x349   : > { %2431 = vmatmul.msk.f32.gmra.mxu1 %vm266_vm0, %v1252_v44 }
 0x34a   : > { %1689 = vmatpush.msrb.mxu3 %v2960_v11 }
 0x34e   : > { %v1342_v52 = vpop.f32.mrf.mxu2 }
 0x34f   : > { %2435 = vmatmul.msk.f32.gmra.mxu3 %vm266_vm0, %v1342_v52 }
 0x350   : > { %v1460_v50 = vpop.f32.mrf.mxu0 }
 0x351   : > { %2443 = vmatmul.msk.f32.vlgmr.msra.gmra.mxu1 %vm266_vm0, %v1460_v50 }
 0x352   : > { %1778 = vmatpush.msra.mxu1 %v2945_v10 }
 0x354   : > { %1779 = vmatpush.msra.mxu1 %v2960_v11 }
 0x358   : > { %v1463_v47 = vpop.f32.mrf.mxu0 }
 0x359   : > { %2444 = vmatmul.msk.f32.gmra.mxu1 %vm266_vm0, %v1463_v47 }
 0x36d   : > { %s2496_s10 = spop %2495 }
 0x36e   : > { %s3233_s18 = spop %2497 }
 0x36f   : > { %s1023_s21 = smul.f32 %s3233_s18, %s2496_s10 }
 0x371   : > { %v1024_v10 = vstv %s1023_s21 }
 0x372   : > { %1026 = vst.msk [vmem:[%s3239_s26] sm:$0x1] %vm1025_vm14, %v1024_v10 }
 0x3ae   : > { %v1134_v11 = vpop.f32.mrf.mxu1 }
 0x3af   : > { %v1140_v51 = vmax.f32 %v1134_v11, 1e-20 }
 0x3b1   : > { %v1196_v53 = vmul.f32 %v1140_v51, %v3094_v22  ;;  %v1284_v54 = vmul.f32 %v1140_v51, %v3096_v26  ;;  %v3246_v55 = vmul.f32 %v1140_v51, %v3098_v27 }
 0x3b3   : > { %2578 = vrsqrt.f32 %v1196_v53  ;;  %vm1293_vm15 = vcmp.eq.f32.partialorder %v1284_v54, inf  ;;  %vm1295_vm1 = vcmp.eq.f32.partialorder %v1284_v54, 0.0  ;;  %v1296_v21 = vand.u32 2147483648, %v1284_v54 }
 0x3b4   : > { %2580 = vrsqrt.f32 %v1284_v54  ;;  %vm1205_vm2 = vcmp.eq.f32.partialorder %v1196_v53, inf  ;;  %vm1207_vm3 = vcmp.eq.f32.partialorder %v1196_v53, 0.0  ;;  %v1208_v39 = vand.u32 2147483648, %v1196_v53 }
 0x3b5   : > { %2582 = vrsqrt.f32 %v3246_v55  ;;  %vm1383_vm4 = vcmp.eq.f32.partialorder %v3246_v55, inf  ;;  %vm1385_vm5 = vcmp.eq.f32.partialorder %v3246_v55, 0.0 }
 0x3b6   : > { %v1137_v56 = vpop.f32.mrf.mxu1 }
 0x3b7   : > { %v1141_v30 = vmax.f32 %v1137_v56, 1e-20 }
 0x3b9   : > { %v2579_v57 = vpop.eup %2578  ;;  %v3250_v61 = vmul.f32 %v1141_v30, %v3109_v34  ;;  %v3253_v63 = vmul.f32 %v1141_v30, %v3111_v36  ;;  %v3256_v17 = vmul.f32 %v1141_v30, %v3113_v37 }
 0x3ba   : > { %v2581_v59 = vpop.eup %2580  ;;  %v1199_v0 = vmul.f32 %v2579_v57, %v1196_v53  ;;  %v3259_v19 = vpop.f32.mrf.mxu3 }
 0x3bb   : > { %v2583_v58 = vpop.eup %2582  ;;  %2584 = vrsqrt.f32 %v3250_v61  ;;  %v1287_v60 = vmul.f32 %v2581_v59, %v1284_v54  ;;  %vm1305_vm6 = vcmp.eq.f32.partialorder %v3253_v63, inf  ;;  %vm1217_vm7 = vcmp.eq.f32.partialorder %v3250_v61, inf }
 0x3bc   : > { %2586 = vrsqrt.f32 %v3253_v63  ;;  %v1200_v1 = vmul.f32 %v2579_v57, %v1199_v0  ;;  %v1377_v6 = vmul.f32 %v2583_v58, %v3246_v55  ;;  %vm1219_vm8 = vcmp.eq.f32.partialorder %v3250_v61, 0.0 }
 0x3bd   : > { %2588 = vrsqrt.f32 %v3256_v17  ;;  %v1288_v31 = vmul.f32 %v2581_v59, %v1287_v60  ;;  %vm1307_vm9 = vcmp.eq.f32.partialorder %v3253_v63, 0.0  ;;  %vm1395_vm10 = vcmp.eq.f32.partialorder %v3256_v17, inf }
 0x3be   : > { %v3263_v62 = vpop.f32.mrf.mxu1  ;;  %v1201_v5 = vmul.f32 0.5, %v1200_v1  ;;  %v1378_v13 = vmul.f32 %v2583_v58, %v1377_v6  ;;  %vm1397_vm11 = vcmp.eq.f32.partialorder %v3256_v17, 0.0 }
 0x3bf   : > { %v1289_v9 = vmul.f32 0.5, %v1288_v31 }
 0x3c0   : > { %v1202_v12 = vsub.f32 1.5, %v1201_v5  ;;  %v1379_v43 = vmul.f32 0.5, %v1378_v13 }
 0x3c1   : > { %v2585_v3 = vpop.eup %2584  ;;  %v1290_v14 = vsub.f32 1.5, %v1289_v9 }
 0x3c2   : > { %v2587_v42 = vpop.eup %2586  ;;  %v1203_v15 = vmul.f32 %v2579_v57, %v1202_v12  ;;  %v1211_v16 = vmul.f32 %v2585_v3, %v3250_v61  ;;  %v1380_v35 = vsub.f32 1.5, %v1379_v43  ;;  %v3269_v49 = vpop.f32.mrf.mxu3  ;;  %v1220_v12 = vand.u32 2147483648, %v3250_v61 }
 0x3c3   : > { %v2589_v18 = vpop.eup %2588  ;;  %v1291_v20 = vmul.f32 %v2581_v59, %v1290_v14  ;;  %v1299_v23 = vmul.f32 %v2587_v42, %v3253_v63 }
 0x3c4   : > { %v1204_v28 = vmul.f32 %v1203_v15, %v1196_v53  ;;  %v1212_v2 = vmul.f32 %v2585_v3, %v1211_v16  ;;  %v1389_v7 = vmul.f32 %v2589_v18, %v3256_v17  ;;  %v1381_v44 = vmul.f32 %v2583_v58, %v1380_v35 }
 0x3c5   : > { %v1292_v38 = vmul.f32 %v1291_v20, %v1284_v54  ;;  %v1300_v45 = vmul.f32 %v2587_v42, %v1299_v23 }
 0x3c6   : > { %v1206_v46 = vsel %vm1205_vm2, %v1196_v53, %v1204_v28  ;;  %v3271_v29 = vpop.f32.mrf.mxu1  ;;  %v1213_v48 = vmul.f32 0.5, %v1212_v2  ;;  %v1390_v52 = vmul.f32 %v2589_v18, %v1389_v7  ;;  %v1382_v30 = vmul.f32 %v1381_v44, %v3246_v55 }
 0x3c7   : > { %v1294_v50 = vsel %vm1293_vm15, %v1284_v54, %v1292_v38  ;;  %v1209_v47 = vsel %vm1207_vm3, %v1208_v39, %v1206_v46  ;;  %v1301_v10 = vmul.f32 0.5, %v1300_v45  ;;  %v1386_v53 = vand.u32 2147483648, %v3246_v55 }
 0x3c8   : > { %v1297_v11 = vsel %vm1295_vm1, %v1296_v21, %v1294_v50  ;;  %v1222_v51 = vadd.f32 1e-20, %v1209_v47  ;;  %v1214_v56 = vsub.f32 1.5, %v1213_v48  ;;  %v1391_v0 = vmul.f32 0.5, %v1390_v52 }
 0x3c9   : > { %v1310_v57 = vadd.f32 1e-20, %v1297_v11  ;;  %v1302_v59 = vsub.f32 1.5, %v1301_v10  ;;  %v1384_v60 = vsel %vm1383_vm4, %v3246_v55, %v1382_v30 }
 0x3ca   : > { %2590 = vrcp.f32 %v1222_v51  ;;  %v1215_v58 = vmul.f32 %v2585_v3, %v1214_v56  ;;  %v1387_v31 = vsel %vm1385_vm5, %v1386_v53, %v1384_v60  ;;  %v1392_v54 = vsub.f32 1.5, %v1391_v0  ;;  %v1368_v16 = vpop.f32.mrf.mxu3 }
 0x3cb   : > { %2592 = vrcp.f32 %v1310_v57  ;;  %v1303_v1 = vmul.f32 %v2587_v42, %v1302_v59  ;;  %v1400_v6 = vadd.f32 1e-20, %v1387_v31  ;;  %v1308_v3 = vand.u32 2147483648, %v3253_v63 }
 0x3cc   : > { %v1216_v5 = vmul.f32 %v1215_v58, %v3250_v61  ;;  %v1393_v13 = vmul.f32 %v2589_v18, %v1392_v54  ;;  %v1398_v18 = vand.u32 2147483648, %v3256_v17 }
 0x3cd   : > { %v1304_v9 = vmul.f32 %v1303_v1, %v3253_v63  ;;  %2594 = vrcp.f32 %v1400_v6 }
 0x3ce   : > { %v1218_v55 = vsel %vm1217_vm7, %v3250_v61, %v1216_v5  ;;  %v1489_v14 = vpop.f32.mrf.mxu1  ;;  %v1394_v43 = vmul.f32 %v1393_v13, %v3256_v17 }
 0x3cf   : > { %v1306_v42 = vsel %vm1305_vm6, %v3253_v63, %v1304_v9  ;;  %v1221_v15 = vsel %vm1219_vm8, %v1220_v12, %v1218_v55  ;;  %v1495_v48 = vmul.f32 0.0625, %v1489_v14  ;;  %v3308_v9 = vld [vmem:[%s3542_s0] sm:$0xff] }
 0x3d0   : > { %v2591_v20 = vpop.eup %2590  ;;  %v1309_v21 = vsel %vm1307_vm9, %v1308_v3, %v1306_v42  ;;  %v1223_v23 = vadd.f32 1e-20, %v1221_v15  ;;  %v1396_v35 = vsel %vm1395_vm10, %v3256_v17, %v1394_v43  ;;  %v3315_v3 = vld [vmem:[%s2888_s6 + $0x38] sm:$0xff]  ;;  %v3320_v42 = vld [vmem:[%s2888_s6 + $0x30] sm:$0xff] }
 0x3d1   : > { %v2593_v28 = vpop.eup %2592  ;;  %v1226_v61 = vmul.f32 %v2591_v20, %v3259_v19  ;;  %v1311_v2 = vadd.f32 1e-20, %v1309_v21  ;;  %v1399_v7 = vsel %vm1397_vm11, %v1398_v18, %v1396_v35  ;;  %v3329_v21 = vld [vmem:[%s3542_s0 + $0x8] sm:$0xff] }
 0x3d2   : > { %v1314_v63 = vmul.f32 %v2593_v28, %v3263_v62  ;;  %2596 = vrcp.f32 %v1223_v23  ;;  %v1401_v39 = vadd.f32 1e-20, %v1399_v7  ;;  %v1497_v62 = vsub.f32 %v3189_v8, %v1495_v48  ;;  %v1371_v56 = vpop.f32.mrf.mxu3 }
 0x3d3   : > { %v1228_v38 = vmax.f32 %v1226_v61, -1.0  ;;  %2598 = vrcp.f32 %v1311_v2  ;;  %v2595_v45 = vpop.eup %2594  ;;  %v2652_v2 = vld [vmem:[%s3543_s1 + $0x8] sm:$0xff] }
 0x3d4   : > { %v1316_v46 = vmax.f32 %v1314_v63, -1.0  ;;  %v1404_v44 = vmul.f32 %v2595_v45, %v1368_v16  ;;  %2600 = vrcp.f32 %v1401_v39  ;;  %v1499_v31 = vmul.f32 %v1497_v62, %v1497_v62  ;;  %v2653_v63 = vld [vmem:[%s3543_s1] sm:$0xff] }
 0x3d5   : > { %v1733_v12 = vmul.f32 %v1497_v62, %v3013_v40  ;;  %v1643_v13 = vmul.f32 %v1497_v62, %v2999_v32 }
 0x3d6   : > { %v1318_v52 = vmax.f32 %v1228_v38, %v1316_v46  ;;  %v1492_v50 = vpop.f32.mrf.mxu1  ;;  %v1406_v10 = vmax.f32 %v1404_v44, -1.0 }
 0x3d7   : > { %v1496_v19 = vmul.f32 0.0625, %v1492_v50 }
 0x3d8   : > { %v2597_v47 = vpop.eup %2596  ;;  %v1408_v57 = vmax.f32 %v1318_v52, %v1406_v10 }
 0x3d9   : > { %v2599_v11 = vpop.eup %2598  ;;  %v1227_v17 = vmul.f32 %v2597_v47, %v3269_v49  ;;  %v1498_v51 = vsub.f32 %v3186_v4, %v1496_v19  ;;  %v1555_v49 = vmul.f32 %v1497_v62, %v2985_v24 }
 0x3da   : > { %v1315_v30 = vmul.f32 %v2599_v11, %v3271_v29  ;;  %v2601_v59 = vpop.eup %2600  ;;  %v2436_v54 = vclamps-f32 %v1408_v57, 1.0 }
 0x3db   : > { %v1229_v53 = vmax.f32 %v1227_v17, -1.0  ;;  %v1500_v0 = vmul.f32 %v1498_v51, %v1498_v51  ;;  %v1556_v58 = vmul.f32 %v1498_v51, %v2988_v25  ;;  %v1405_v1 = vmul.f32 %v2601_v59, %v1371_v56 }
 0x3dc   : > { %v1317_v60 = vmax.f32 %v1315_v30, -1.0  ;;  %v1734_v5 = vmul.f32 %v1498_v51, %v3016_v41  ;;  %v1644_v29 = vmul.f32 %v1498_v51, %v3002_v33  ;;  %v1414_v55 = vsub.f32 1.0, %v2436_v54 }
 0x3dd   : > { %1515 = vmatpush.msra.mxu2 %v1500_v0  ;;  %1571 = vmatpush.msrb.mxu0 %v1556_v58  ;;  %v1407_v4 = vmax.f32 %v1405_v1, -1.0 }
 0x3de   : > { %v1319_v8 = vmax.f32 %v1229_v53, %v1317_v60  ;;  %v1416_v16 = vsel %vm266_vm0, %v1414_v55, 0.0 }
 0x3df   : > { %1516 = vmatpush.msra.mxu2 %v1499_v31  ;;  %1572 = vmatpush.msrb.mxu0 %v1555_v49 }
 0x3e0   : > { %v1409_v6 = vmax.f32 %v1319_v8, %v1407_v4  ;;  %2445 = vmatmul.msk.f32.vlgmr.msra.gmra.mxu2 %vm266_vm0, %v3308_v9  ;;  %2449 = vmatmul.msk.f32.vlgmr.msrb.gmra.mxu0 %vm266_vm0, %v3308_v9 }
 0x3e1   : > { %1749 = vmatpush.msra.mxu0 %v1734_v5  ;;  %1659 = vmatpush.msrb.mxu2 %v1644_v29 }
 0x3e2   : > { %v2437_v14 = vclamps-f32 %v1409_v6, 1.0 }
 0x3e3   : > { %1750 = vmatpush.msra.mxu0 %v1733_v12  ;;  %1660 = vmatpush.msrb.mxu2 %v1643_v13 }
 0x3e4   : > { %v1415_v15 = vsub.f32 1.0, %v2437_v14 }
 0x3e5   : > { %1870 = vmatpush.msra.mxu2 %v3315_v3 }
 0x3e6   : > { %v1417_v43 = vsel %vm266_vm0, %v1415_v15, 0.0 }
 0x3e7   : > { %1871 = vmatpush.msra.mxu2 %v3320_v42  ;;  %v1418_v20 = vadd.f32 %v1417_v43, %v1416_v16 }
 0x3e8   : > { %2446 = vmatmul.msk.f32.gmra.mxu2 %vm266_vm0, %v3329_v21  ;;  %2450 = vmatmul.msk.f32.gmra.mxu0 %vm266_vm0, %v3329_v21 }
 0x3e9   : > { %1419 = vadd.xlane.f32.xlu0 %v1418_v20 }
 0x3f0   : > { %2453 = vmatmul.msk.f32.vlgmr.msrb.gmra.mxu2 %vm266_vm0, %v3308_v9  ;;  %2457 = vmatmul.msk.f32.vlgmr.msra.gmra.mxu0 %vm266_vm0, %v3308_v9 }
 0x3f8   : > { %2454 = vmatmul.msk.f32.gmra.mxu2 %vm266_vm0, %v3329_v21  ;;  %2458 = vmatmul.msk.f32.gmra.mxu0 %vm266_vm0, %v3329_v21 }
 0x400   : > { %2466 = vmatmul.msk.f32.vlgmr.msra.gmra.mxu2 %vm266_vm0, %v3308_v9 }
 0x408   : > { %2467 = vmatmul.msk.f32.gmra.mxu2 %vm266_vm0, %v3329_v21 }
 0x45c   : > { %v1420_v23 = vpop.xlane.xlu0 %1419 }
 0x45d   : > { %v1421_v18 = vrot.slane %v1420_v23, 4  ;;  %v1574_v28 = vpop.f32.mrf.mxu0 }
 0x45e   : > { %2451 = vmatmul.msk.f32.vlgmr.msrb.gmra.mxu1 %vm266_vm0, %v1574_v28 }
 0x45f   : > { %v1422_v61 = vadd.f32 %v1421_v18, %v1420_v23  ;;  %1957 = vmatpush.msrb.mxu1 %v2652_v2 }
 0x461   : > { %v1423_v35 = vrot.slane %v1422_v61, 2  ;;  %1958 = vmatpush.msrb.mxu1 %v2653_v63 }
 0x463   : > { %v1424_v7 = vadd.f32 %v1423_v35, %v1422_v61  ;;  %v1518_v38 = vpop.f32.mrf.mxu2 }
 0x464   : > { %2447 = vmatmul.msk.f32.vlgmr.msra.gmra.mxu3 %vm266_vm0, %v1518_v38 }
 0x465   : > { %v1425_v39 = vrot.slane %v1424_v7, 1  ;;  %1899 = vmatpush.msra.mxu3 %v2652_v2  ;;  %v1577_v45 = vpop.f32.mrf.mxu0 }
 0x466   : > { %2452 = vmatmul.msk.f32.gmra.mxu1 %vm266_vm0, %v1577_v45 }
 0x467   : > { %v1426_v46 = vadd.f32 %v1425_v39, %v1424_v7  ;;  %1900 = vmatpush.msra.mxu3 %v2653_v63 }
 0x469   : > { %2499 = vpush %v1426_v46 }
 0x46b   : > { %v1521_v48 = vpop.f32.mrf.mxu2 }
 0x46c   : > { %2448 = vmatmul.msk.f32.gmra.mxu3 %vm266_vm0, %v1521_v48 }
 0x46d   : > { %v1752_v44 = vpop.f32.mrf.mxu0 }
 0x46e   : > { %2459 = vmatmul.msk.f32.vlgmr.msra.gmra.mxu1 %vm266_vm0, %v1752_v44 }
 0x46f   : > { %2101 = vmatpush.msra.mxu1 %v2652_v2 }
 0x471   : > { %2102 = vmatpush.msra.mxu1 %v2653_v63 }
 0x473   : > { %v1662_v52 = vpop.f32.mrf.mxu2 }
 0x474   : > { %2455 = vmatmul.msk.f32.vlgmr.msrb.gmra.mxu3 %vm266_vm0, %v1662_v52 }
 0x475   : > { %2013 = vmatpush.msrb.mxu3 %v2652_v2  ;;  %v1755_v50 = vpop.f32.mrf.mxu0 }
 0x476   : > { %2460 = vmatmul.msk.f32.gmra.mxu1 %vm266_vm0, %v1755_v50 }
 0x477   : > { %2014 = vmatpush.msrb.mxu3 %v2653_v63 }
 0x47b   : > { %v1665_v19 = vpop.f32.mrf.mxu2 }
 0x47c   : > { %2456 = vmatmul.msk.f32.gmra.mxu3 %vm266_vm0, %v1665_v19 }
 0x483   : > { %v1873_v47 = vpop.f32.mrf.mxu2 }
 0x484   : > { %2468 = vmatmul.msk.f32.vlgmr.msra.gmra.mxu3 %vm266_vm0, %v1873_v47 }
 0x485   : > { %2191 = vmatpush.msra.mxu3 %v2652_v2 }
 0x487   : > { %2192 = vmatpush.msra.mxu3 %v2653_v63 }
 0x48b   : > { %v1876_v10 = vpop.f32.mrf.mxu2 }
 0x48c   : > { %2469 = vmatmul.msk.f32.gmra.mxu3 %vm266_vm0, %v1876_v10 }
 0x49a   : > { %s2500_s27 = spop %2499 }
 0x49b   : > { %s1436_s25 = smul.f32 %s2500_s27, %s3233_s18 }
 0x49d   : > { %v1437_v11 = vstv %s1436_s25 }
 0x49e   : > { %2438 = vst.msk [vmem:[%s3239_s26 + $0x1] sm:$0x1] %vm1025_vm14, %v1437_v11 }
 0x4db   : > { %v3382_v54 = vpop.f32.mrf.mxu1 }
 0x4e3   : > { %v3392_v44 = vpop.f32.mrf.mxu1 }
 0x4e7   : > { %v1547_v17 = vpop.f32.mrf.mxu3 }
 0x4e8   : > { %v1553_v62 = vmax.f32 %v1547_v17, 1e-20 }
 0x4ea   : > { %v1609_v51 = vmul.f32 %v1553_v62, %v3094_v22  ;;  %v1697_v56 = vmul.f32 %v1553_v62, %v3096_v26  ;;  %v3369_v30 = vmul.f32 %v1553_v62, %v3098_v27 }
 0x4ec   : > { %2602 = vrsqrt.f32 %v1609_v51  ;;  %vm1706_vm12 = vcmp.eq.f32.partialorder %v1697_v56, inf  ;;  %vm1708_vm13 = vcmp.eq.f32.partialorder %v1697_v56, 0.0  ;;  %v1709_v2 = vand.u32 2147483648, %v1697_v56 }
 0x4ed   : > { %2604 = vrsqrt.f32 %v1697_v56  ;;  %vm1618_vm15 = vcmp.eq.f32.partialorder %v1609_v51, inf  ;;  %vm1620_vm1 = vcmp.eq.f32.partialorder %v1609_v51, 0.0  ;;  %v1621_v46 = vand.u32 2147483648, %v1609_v51 }
 0x4ee   : > { %2606 = vrsqrt.f32 %v3369_v30  ;;  %vm1796_vm2 = vcmp.eq.f32.partialorder %v3369_v30, inf  ;;  %vm1798_vm3 = vcmp.eq.f32.partialorder %v3369_v30, 0.0 }
 0x4ef   : > { %v1550_v57 = vpop.f32.mrf.mxu3 }
 0x4f0   : > { %v1554_v59 = vmax.f32 %v1550_v57, 1e-20 }
 0x4f2   : > { %v2603_v53 = vpop.eup %2602  ;;  %v3373_v0 = vmul.f32 %v1554_v59, %v3109_v34  ;;  %v3376_v58 = vmul.f32 %v1554_v59, %v3111_v36  ;;  %v3379_v60 = vmul.f32 %v1554_v59, %v3113_v37 }
 0x4f3   : > { %v2605_v1 = vpop.eup %2604  ;;  %v1612_v31 = vmul.f32 %v2603_v53, %v1609_v51 }
 0x4f4   : > { %v2607_v49 = vpop.eup %2606  ;;  %2608 = vrsqrt.f32 %v3373_v0  ;;  %v1700_v8 = vmul.f32 %v2605_v1, %v1697_v56  ;;  %vm1718_vm4 = vcmp.eq.f32.partialorder %v3376_v58, inf  ;;  %vm1630_vm5 = vcmp.eq.f32.partialorder %v3373_v0, inf }
 0x4f5   : > { %2610 = vrsqrt.f32 %v3376_v58  ;;  %v1613_v4 = vmul.f32 %v2603_v53, %v1612_v31  ;;  %v1790_v12 = vmul.f32 %v2607_v49, %v3369_v30  ;;  %vm1632_vm6 = vcmp.eq.f32.partialorder %v3373_v0, 0.0 }
 0x4f6   : > { %2612 = vrsqrt.f32 %v3379_v60  ;;  %v1701_v5 = vmul.f32 %v2605_v1, %v1700_v8  ;;  %vm1720_vm7 = vcmp.eq.f32.partialorder %v3376_v58, 0.0  ;;  %vm1808_vm8 = vcmp.eq.f32.partialorder %v3379_v60, inf }
 0x4f7   : > { %v3386_v29 = vpop.f32.mrf.mxu3  ;;  %v1614_v6 = vmul.f32 0.5, %v1613_v4  ;;  %v1791_v14 = vmul.f32 %v2607_v49, %v1790_v12  ;;  %vm1810_vm9 = vcmp.eq.f32.partialorder %v3379_v60, 0.0 }
 0x4f8   : > { %v1702_v13 = vmul.f32 0.5, %v1701_v5 }
 0x4f9   : > { %v1615_v55 = vsub.f32 1.5, %v1614_v6  ;;  %v1792_v18 = vmul.f32 0.5, %v1791_v14 }
 0x4fa   : > { %v2609_v15 = vpop.eup %2608  ;;  %v1703_v16 = vsub.f32 1.5, %v1702_v13 }
 0x4fb   : > { %v2611_v43 = vpop.eup %2610  ;;  %v1616_v20 = vmul.f32 %v2603_v53, %v1615_v55  ;;  %v1624_v23 = vmul.f32 %v2609_v15, %v3373_v0  ;;  %v1793_v38 = vsub.f32 1.5, %v1792_v18 }
 0x4fc   : > { %v2613_v28 = vpop.eup %2612  ;;  %v1704_v61 = vmul.f32 %v2605_v1, %v1703_v16  ;;  %v1712_v35 = vmul.f32 %v2611_v43, %v3376_v58  ;;  %v1633_v16 = vand.u32 2147483648, %v3373_v0 }
 0x4fd   : > { %v1617_v63 = vmul.f32 %v1616_v20, %v1609_v51  ;;  %v1625_v7 = vmul.f32 %v2609_v15, %v1624_v23  ;;  %v1802_v39 = vmul.f32 %v2613_v28, %v3379_v60  ;;  %v1794_v47 = vmul.f32 %v2607_v49, %v1793_v38 }
 0x4fe   : > { %v1705_v45 = vmul.f32 %v1704_v61, %v1697_v56  ;;  %v1713_v48 = vmul.f32 %v2611_v43, %v1712_v35  ;;  %v1721_v20 = vand.u32 2147483648, %v3376_v58  ;;  %v1781_v61 = vpop.f32.mrf.mxu1 }
 0x4ff   : > { %v1619_v52 = vsel %vm1618_vm15, %v1609_v51, %v1617_v63  ;;  %v3394_v50 = vpop.f32.mrf.mxu3  ;;  %v1626_v19 = vmul.f32 0.5, %v1625_v7  ;;  %v1803_v10 = vmul.f32 %v2613_v28, %v1802_v39  ;;  %v1795_v1 = vmul.f32 %v1794_v47, %v3369_v30 }
 0x500   : > { %v1707_v11 = vsel %vm1706_vm12, %v1697_v56, %v1705_v45  ;;  %v1622_v17 = vsel %vm1620_vm1, %v1621_v46, %v1619_v52  ;;  %v1714_v62 = vmul.f32 0.5, %v1713_v48  ;;  %v1799_v51 = vand.u32 2147483648, %v3369_v30 }
 0x501   : > { %v1710_v57 = vsel %vm1708_vm13, %v1709_v2, %v1707_v11  ;;  %v1635_v59 = vadd.f32 1e-20, %v1622_v17  ;;  %v1627_v53 = vsub.f32 1.5, %v1626_v19  ;;  %v1804_v4 = vmul.f32 0.5, %v1803_v10 }
 0x502   : > { %v1723_v31 = vadd.f32 1e-20, %v1710_v57  ;;  %v1715_v8 = vsub.f32 1.5, %v1714_v62  ;;  %v1797_v5 = vsel %vm1796_vm2, %v3369_v30, %v1795_v1 }
 0x503   : > { %2614 = vrcp.f32 %v1635_v59  ;;  %v1628_v49 = vmul.f32 %v2609_v15, %v1627_v53  ;;  %v1800_v12 = vsel %vm1798_vm3, %v1799_v51, %v1797_v5  ;;  %v1805_v56 = vsub.f32 1.5, %v1804_v4 }
 0x504   : > { %2616 = vrcp.f32 %v1723_v31  ;;  %v1716_v6 = vmul.f32 %v2611_v43, %v1715_v8  ;;  %v1813_v55 = vadd.f32 1e-20, %v1800_v12 }
 0x505   : > { %v1629_v13 = vmul.f32 %v1628_v49, %v3373_v0  ;;  %v1806_v15 = vmul.f32 %v2613_v28, %v1805_v56  ;;  %v1811_v28 = vand.u32 2147483648, %v3379_v60 }
 0x506   : > { %v1717_v14 = vmul.f32 %v1716_v6, %v3376_v58  ;;  %2618 = vrcp.f32 %v1813_v55  ;;  %v1784_v31 = vpop.f32.mrf.mxu1 }
 0x507   : > { %v1631_v30 = vsel %vm1630_vm5, %v3373_v0, %v1629_v13  ;;  %v1902_v43 = vpop.f32.mrf.mxu3  ;;  %v1807_v2 = vmul.f32 %v1806_v15, %v3379_v60 }
 0x508   : > { %v1719_v23 = vsel %vm1718_vm4, %v3376_v58, %v1717_v14  ;;  %v1634_v18 = vsel %vm1632_vm6, %v1633_v16, %v1631_v30  ;;  %v1908_v10 = vmul.f32 0.0625, %v1902_v43 }
 0x509   : > { %v2615_v35 = vpop.eup %2614  ;;  %v1722_v63 = vsel %vm1720_vm7, %v1721_v20, %v1719_v23  ;;  %v1636_v7 = vadd.f32 1e-20, %v1634_v18  ;;  %v1809_v45 = vsel %vm1808_vm8, %v3379_v60, %v1807_v2 }
 0x50a   : > { %v2617_v38 = vpop.eup %2616  ;;  %v1639_v0 = vmul.f32 %v2615_v35, %v3382_v54  ;;  %v1724_v39 = vadd.f32 1e-20, %v1722_v63  ;;  %v1812_v46 = vsel %vm1810_vm9, %v1811_v28, %v1809_v45 }
 0x50b   : > { %v1727_v58 = vmul.f32 %v2617_v38, %v3386_v29  ;;  %2620 = vrcp.f32 %v1636_v7  ;;  %v1814_v52 = vadd.f32 1e-20, %v1812_v46  ;;  %v1910_v29 = vsub.f32 %v3320_v42, %v1908_v10 }
 0x50c   : > { %v1641_v48 = vmax.f32 %v1639_v0, -1.0  ;;  %2622 = vrcp.f32 %v1724_v39  ;;  %v2619_v19 = vpop.eup %2618 }
 0x50d   : > { %v1729_v47 = vmax.f32 %v1727_v58, -1.0  ;;  %v1817_v11 = vmul.f32 %v2619_v19, %v1781_v61  ;;  %2624 = vrcp.f32 %v1814_v52  ;;  %v1912_v13 = vmul.f32 %v1910_v29, %v1910_v29 }
 0x50e   : > { %v2056_v15 = vmul.f32 %v1910_v29, %v2999_v32 }
 0x50f   : > { %v1731_v17 = vmax.f32 %v1641_v48, %v1729_v47  ;;  %v1905_v62 = vpop.f32.mrf.mxu3  ;;  %v1819_v59 = vmax.f32 %v1817_v11, -1.0 }
 0x510   : > { %v1909_v54 = vmul.f32 0.0625, %v1905_v62 }
 0x511   : > { %v2621_v57 = vpop.eup %2620  ;;  %v1821_v51 = vmax.f32 %v1731_v17, %v1819_v59 }
 0x512   : > { %v2623_v53 = vpop.eup %2622  ;;  %v1640_v60 = vmul.f32 %v2621_v57, %v3392_v44  ;;  %v1911_v1 = vsub.f32 %v3315_v3, %v1909_v54  ;;  %v1968_v44 = vmul.f32 %v1910_v29, %v2985_v24 }
 0x513   : > { %v1728_v8 = vmul.f32 %v2623_v53, %v3394_v50  ;;  %v2625_v4 = vpop.eup %2624  ;;  %v2461_v14 = vclamps-f32 %v1821_v51, 1.0 }
 0x514   : > { %v1642_v49 = vmax.f32 %v1640_v60, -1.0  ;;  %v1913_v5 = vmul.f32 %v1911_v1, %v1911_v1  ;;  %v1969_v6 = vmul.f32 %v1911_v1, %v2988_v25  ;;  %v1818_v56 = vmul.f32 %v2625_v4, %v1784_v31 }
 0x515   : > { %v1730_v12 = vmax.f32 %v1728_v8, -1.0  ;;  %v2147_v3 = vmul.f32 %v1911_v1, %v3016_v41  ;;  %v2057_v50 = vmul.f32 %v1911_v1, %v3002_v33  ;;  %v2146_v25 = vmul.f32 %v1910_v29, %v3013_v40 }
 0x516   : > { %1928 = vmatpush.msrb.mxu0 %v1913_v5  ;;  %1984 = vmatpush.msrb.mxu2 %v1969_v6  ;;  %v1820_v42 = vmax.f32 %v1818_v56, -1.0  ;;  %v1827_v41 = vsub.f32 1.0, %v2461_v14 }
 0x517   : > { %v1732_v55 = vmax.f32 %v1642_v49, %v1730_v12 }
 0x518   : > { %1929 = vmatpush.msrb.mxu0 %v1912_v13  ;;  %1985 = vmatpush.msrb.mxu2 %v1968_v44  ;;  %v1829_v33 = vsel %vm266_vm0, %v1827_v41, 0.0 }
 0x519   : > { %v1822_v16 = vmax.f32 %v1732_v55, %v1820_v42  ;;  %2470 = vmatmul.msk.f32.vlgmr.msrb.gmra.mxu0 %vm266_vm0, %v3308_v9  ;;  %2474 = vmatmul.msk.f32.vlgmr.msrb.gmra.mxu2 %vm266_vm0, %v3308_v9 }
 0x51a   : > { %2162 = vmatpush.msra.mxu2 %v2147_v3  ;;  %2072 = vmatpush.msra.mxu0 %v2057_v50 }
 0x51b   : > { %v2462_v24 = vclamps-f32 %v1822_v16, 1.0 }
 0x51c   : > { %2163 = vmatpush.msra.mxu2 %v2146_v25  ;;  %2073 = vmatpush.msra.mxu0 %v2056_v15 }
 0x51d   : > { %v1828_v20 = vsub.f32 1.0, %v2462_v24 }
 0x51f   : > { %v1830_v30 = vsel %vm266_vm0, %v1828_v20, 0.0 }
 0x520   : > { %v1831_v43 = vadd.f32 %v1830_v30, %v1829_v33 }
 0x521   : > { %2471 = vmatmul.msk.f32.gmra.mxu0 %vm266_vm0, %v3329_v21  ;;  %2475 = vmatmul.msk.f32.gmra.mxu2 %vm266_vm0, %v3329_v21 }
 0x522   : > { %1832 = vadd.xlane.f32.xlu1 %v1831_v43 }
 0x529   : > { %2478 = vmatmul.msk.f32.vlgmr.msra.gmra.mxu0 %vm266_vm0, %v3308_v9  ;;  %2482 = vmatmul.msk.f32.vlgmr.msra.gmra.mxu2 %vm266_vm0, %v3308_v9 }
 0x531   : > { %2479 = vmatmul.msk.f32.gmra.mxu0 %vm266_vm0, %v3329_v21  ;;  %2483 = vmatmul.msk.f32.gmra.mxu2 %vm266_vm0, %v3329_v21 }
 0x595   : > { %v1833_v32 = vpop.xlane.xlu1 %1832 }
 0x596   : > { %v1834_v40 = vrot.slane %v1833_v32, 4  ;;  %v1931_v23 = vpop.f32.mrf.mxu0 }
 0x597   : > { %2472 = vmatmul.msk.f32.vlgmr.msrb.gmra.mxu1 %vm266_vm0, %v1931_v23 }
 0x598   : > { %v1835_v18 = vadd.f32 %v1834_v40, %v1833_v32 }
 0x59a   : > { %v1836_v61 = vrot.slane %v1835_v18, 2 }
 0x59c   : > { %v1837_v2 = vadd.f32 %v1836_v61, %v1835_v18  ;;  %v1987_v35 = vpop.f32.mrf.mxu2 }
 0x59d   : > { %2476 = vmatmul.msk.f32.vlgmr.msrb.gmra.mxu3 %vm266_vm0, %v1987_v35 }
 0x59e   : > { %v1934_v63 = vpop.f32.mrf.mxu0  ;;  %v1838_v7 = vrot.slane %v1837_v2, 1 }
 0x59f   : > { %2473 = vmatmul.msk.f32.gmra.mxu1 %vm266_vm0, %v1934_v63 }
 0x5a0   : > { %v1839_v9 = vadd.f32 %v1838_v7, %v1837_v2 }
 0x5a2   : > { %2501 = vpush %v1839_v9 }
 0x5a4   : > { %v1990_v21 = vpop.f32.mrf.mxu2 }
 0x5a5   : > { %2477 = vmatmul.msk.f32.gmra.mxu3 %vm266_vm0, %v1990_v21 }
 0x5a6   : > { %v2075_v28 = vpop.f32.mrf.mxu0 }
 0x5a7   : > { %2480 = vmatmul.msk.f32.vlgmr.msra.gmra.mxu1 %vm266_vm0, %v2075_v28 }
 0x5ac   : > { %v2165_v38 = vpop.f32.mrf.mxu2 }
 0x5ad   : > { %2484 = vmatmul.msk.f32.vlgmr.msra.gmra.mxu3 %vm266_vm0, %v2165_v38 }
 0x5ae   : > { %v2078_v0 = vpop.f32.mrf.mxu0 }
 0x5af   : > { %2481 = vmatmul.msk.f32.gmra.mxu1 %vm266_vm0, %v2078_v0 }
 0x5b4   : > { %v2168_v39 = vpop.f32.mrf.mxu2 }
 0x5b5   : > { %2485 = vmatmul.msk.f32.gmra.mxu3 %vm266_vm0, %v2168_v39 }
 0x5d3   : > { %s2502_s29 = spop %2501 }
 0x5d4   : > { %s1849_s13 = smul.f32 %s2502_s29, %s3233_s18 }
 0x5d6   : > { %v1850_v45 = vstv %s1849_s13 }
 0x5d7   : > { %2463 = vst.msk [vmem:[%s3239_s26 + $0x2] sm:$0x1] %vm1025_vm14, %v1850_v45 }
 0x614   : > { %v1960_v58 = vpop.f32.mrf.mxu1 }
 0x615   : > { %v1966_v46 = vmax.f32 %v1960_v58, 1e-20 }
 0x617   : > { %v2022_v48 = vmul.f32 %v1966_v46, %v3094_v22  ;;  %v3461_v52 = vmul.f32 %v1966_v46, %v3096_v26  ;;  %v3464_v19 = vmul.f32 %v1966_v46, %v3098_v27 }
 0x619   : > { %2626 = vrsqrt.f32 %v2022_v48  ;;  %vm2031_vm10 = vcmp.eq.f32.partialorder %v2022_v48, inf  ;;  %vm2033_vm11 = vcmp.eq.f32.partialorder %v2022_v48, 0.0  ;;  %v2034_v51 = vand.u32 2147483648, %v2022_v48 }
 0x61a   : > { %2628 = vrsqrt.f32 %v3461_v52  ;;  %vm2119_vm12 = vcmp.eq.f32.partialorder %v3461_v52, inf  ;;  %vm2121_vm13 = vcmp.eq.f32.partialorder %v3461_v52, 0.0  ;;  %v2122_v13 = vand.u32 2147483648, %v3461_v52 }
 0x61b   : > { %2630 = vrsqrt.f32 %v3464_v19  ;;  %vm2209_vm15 = vcmp.eq.f32.partialorder %v3464_v19, inf  ;;  %vm2211_vm1 = vcmp.eq.f32.partialorder %v3464_v19, 0.0  ;;  %v2212_v30 = vand.u32 2147483648, %v3464_v19 }
 0x61c   : > { %v1963_v47 = vpop.f32.mrf.mxu1 }
 0x61d   : > { %v1967_v10 = vmax.f32 %v1963_v47, 1e-20 }
 0x61f   : > { %v2627_v11 = vpop.eup %2626  ;;  %v3469_v17 = vmul.f32 %v1967_v10, %v3109_v34  ;;  %v3472_v62 = vmul.f32 %v1967_v10, %v3111_v36  ;;  %v3475_v22 = vmul.f32 %v1967_v10, %v3113_v37 }
 0x620   : > { %v2629_v26 = vpop.eup %2628  ;;  %v2025_v27 = vmul.f32 %v2627_v11, %v2022_v48  ;;  %v3478_v57 = vpop.f32.mrf.mxu3 }
 0x621   : > { %v2631_v54 = vpop.eup %2630  ;;  %2632 = vrsqrt.f32 %v3469_v17  ;;  %v2113_v53 = vmul.f32 %v2629_v26, %v3461_v52  ;;  %vm2043_vm2 = vcmp.eq.f32.partialorder %v3469_v17, inf  ;;  %v2046_v45 = vand.u32 2147483648, %v3469_v17 }
 0x622   : > { %2634 = vrsqrt.f32 %v3472_v62  ;;  %v2026_v59 = vmul.f32 %v2627_v11, %v2025_v27  ;;  %v2203_v34 = vmul.f32 %v2631_v54, %v3464_v19  ;;  %vm2045_vm3 = vcmp.eq.f32.partialorder %v3469_v17, 0.0 }
 0x623   : > { %2636 = vrsqrt.f32 %v3475_v22  ;;  %v2114_v60 = vmul.f32 %v2629_v26, %v2113_v53  ;;  %vm2131_vm4 = vcmp.eq.f32.partialorder %v3472_v62, inf  ;;  %vm2133_vm5 = vcmp.eq.f32.partialorder %v3472_v62, 0.0 }
 0x624   : > { %v2027_v36 = vmul.f32 0.5, %v2026_v59  ;;  %v2204_v37 = vmul.f32 %v2631_v54, %v2203_v34  ;;  %v2104_v58 = vpop.f32.mrf.mxu1  ;;  %vm2221_vm6 = vcmp.eq.f32.partialorder %v3475_v22, inf  ;;  %v2224_v53 = vand.u32 2147483648, %v3475_v22 }
 0x625   : > { %v2115_v1 = vmul.f32 0.5, %v2114_v60  ;;  %vm2223_vm7 = vcmp.eq.f32.partialorder %v3475_v22, 0.0 }
 0x626   : > { %v2028_v29 = vsub.f32 1.5, %v2027_v36  ;;  %v2205_v31 = vmul.f32 0.5, %v2204_v37 }
 0x627   : > { %v2633_v8 = vpop.eup %2632  ;;  %v2116_v6 = vsub.f32 1.5, %v2115_v1 }
 0x628   : > { %v2635_v4 = vpop.eup %2634  ;;  %v2029_v49 = vmul.f32 %v2627_v11, %v2028_v29  ;;  %v2037_v5 = vmul.f32 %v2633_v8, %v3469_v17  ;;  %v2206_v12 = vsub.f32 1.5, %v2205_v31  ;;  %v3489_v50 = vpop.f32.mrf.mxu3 }
 0x629   : > { %v2637_v56 = vpop.eup %2636  ;;  %v2125_v44 = vmul.f32 %v2635_v4, %v3472_v62  ;;  %v2117_v3 = vmul.f32 %v2629_v26, %v2116_v6 }
 0x62a   : > { %v2030_v55 = vmul.f32 %v2029_v49, %v2022_v48  ;;  %v2038_v42 = vmul.f32 %v2633_v8, %v2037_v5  ;;  %v2207_v14 = vmul.f32 %v2631_v54, %v2206_v12  ;;  %v2215_v25 = vmul.f32 %v2637_v56, %v3475_v22 }
 0x62b   : > { %v2126_v16 = vmul.f32 %v2635_v4, %v2125_v44  ;;  %v2118_v41 = vmul.f32 %v2117_v3, %v3461_v52 }
 0x62c   : > { %v2032_v15 = vsel %vm2031_vm10, %v2022_v48, %v2030_v55  ;;  %v2039_v24 = vmul.f32 0.5, %v2038_v42  ;;  %v2208_v20 = vmul.f32 %v2207_v14, %v3464_v19  ;;  %v2216_v32 = vmul.f32 %v2637_v56, %v2215_v25  ;;  %v2107_v49 = vpop.f32.mrf.mxu1 }
 0x62d   : > { %v2035_v33 = vsel %vm2033_vm11, %v2034_v51, %v2032_v15  ;;  %v2127_v43 = vmul.f32 0.5, %v2126_v16  ;;  %v2120_v18 = vsel %vm2119_vm12, %v3461_v52, %v2118_v41 }
 0x62e   : > { %v2048_v40 = vadd.f32 1e-20, %v2035_v33  ;;  %v2040_v23 = vsub.f32 1.5, %v2039_v24  ;;  %v2210_v61 = vsel %vm2209_vm15, %v3464_v19, %v2208_v20  ;;  %v2123_v2 = vsel %vm2121_vm13, %v2122_v13, %v2120_v18 }
 0x62f   : > { %v2213_v35 = vsel %vm2211_vm1, %v2212_v30, %v2210_v61  ;;  %v2128_v63 = vsub.f32 1.5, %v2127_v43  ;;  %v2217_v7 = vmul.f32 0.5, %v2216_v32  ;;  %v2136_v21 = vadd.f32 1e-20, %v2123_v2 }
 0x630   : > { %2638 = vrcp.f32 %v2048_v40  ;;  %v2041_v9 = vmul.f32 %v2633_v8, %v2040_v23  ;;  %v2226_v28 = vadd.f32 1e-20, %v2213_v35  ;;  %v2134_v19 = vand.u32 2147483648, %v3472_v62  ;;  %v2194_v10 = vpop.f32.mrf.mxu3 }
 0x631   : > { %v2129_v38 = vmul.f32 %v2635_v4, %v2128_v63  ;;  %v2218_v0 = vsub.f32 1.5, %v2217_v7  ;;  %2640 = vrcp.f32 %v2136_v21 }
 0x632   : > { %v2042_v39 = vmul.f32 %v2041_v9, %v3469_v17  ;;  %2642 = vrcp.f32 %v2226_v28 }
 0x633   : > { %v2130_v46 = vmul.f32 %v2129_v38, %v3472_v62  ;;  %v2219_v48 = vmul.f32 %v2637_v56, %v2218_v0 }
 0x634   : > { %v2044_v52 = vsel %vm2043_vm2, %v3469_v17, %v2042_v39 }
 0x635   : > { %v2047_v47 = vsel %vm2045_vm3, %v2046_v45, %v2044_v52  ;;  %v2132_v11 = vsel %vm2131_vm4, %v3472_v62, %v2130_v46  ;;  %v2220_v26 = vmul.f32 %v2219_v48, %v3475_v22 }
 0x636   : > { %v2639_v27 = vpop.eup %2638  ;;  %v2049_v54 = vadd.f32 1e-20, %v2047_v47  ;;  %v2135_v59 = vsel %vm2133_vm5, %v2134_v19, %v2132_v11 }
 0x637   : > { %v2052_v17 = vmul.f32 %v2639_v27, %v3478_v57  ;;  %v2137_v34 = vadd.f32 1e-20, %v2135_v59  ;;  %v2222_v36 = vsel %vm2221_vm6, %v3475_v22, %v2220_v26  ;;  %v2641_v60 = vpop.eup %2640 }
 0x638   : > { %2644 = vrcp.f32 %v2049_v54  ;;  %v2225_v37 = vsel %vm2223_vm7, %v2224_v53, %v2222_v36  ;;  %v2643_v62 = vpop.eup %2642  ;;  %v2140_v1 = vmul.f32 %v2641_v60, %v2104_v58  ;;  %v2197_v56 = vpop.f32.mrf.mxu3 }
 0x639   : > { %v2054_v29 = vmax.f32 %v2052_v17, -1.0  ;;  %2646 = vrcp.f32 %v2137_v34  ;;  %v2227_v31 = vadd.f32 1e-20, %v2225_v37  ;;  %v2230_v8 = vmul.f32 %v2643_v62, %v2194_v10 }
 0x63a   : > { %v2142_v51 = vmax.f32 %v2140_v1, -1.0 }
 0x63b   : > { %2648 = vrcp.f32 %v2227_v31  ;;  %v2232_v57 = vmax.f32 %v2230_v8, -1.0 }
 0x63c   : > { %v2144_v4 = vmax.f32 %v2054_v29, %v2142_v51 }
 0x63e   : > { %v2645_v5 = vpop.eup %2644  ;;  %v2234_v22 = vmax.f32 %v2144_v4, %v2232_v57 }
 0x63f   : > { %v2647_v6 = vpop.eup %2646  ;;  %v2053_v12 = vmul.f32 %v2645_v5, %v3489_v50 }
 0x640   : > { %v2141_v13 = vmul.f32 %v2647_v6, %v2107_v49  ;;  %v2486_v14 = vclamps-f32 %v2234_v22, 1.0 }
 0x641   : > { %v2649_v44 = vpop.eup %2648  ;;  %v2055_v55 = vmax.f32 %v2053_v12, -1.0 }
 0x642   : > { %v2143_v42 = vmax.f32 %v2141_v13, -1.0  ;;  %v2231_v3 = vmul.f32 %v2649_v44, %v2197_v56  ;;  %v2240_v24 = vsub.f32 1.0, %v2486_v14 }
 0x644   : > { %v2145_v16 = vmax.f32 %v2055_v55, %v2143_v42  ;;  %v2233_v25 = vmax.f32 %v2231_v3, -1.0  ;;  %v2242_v33 = vsel %vm266_vm0, %v2240_v24, 0.0 }
 0x646   : > { %v2235_v15 = vmax.f32 %v2145_v16, %v2233_v25 }
 0x648   : > { %v2487_v41 = vclamps-f32 %v2235_v15, 1.0 }
 0x64a   : > { %v2241_v20 = vsub.f32 1.0, %v2487_v41 }
 0x64c   : > { %v2243_v50 = vsel %vm266_vm0, %v2241_v20, 0.0 }
 0x64d   : > { %v2244_v30 = vadd.f32 %v2243_v50, %v2242_v33 }
 0x64f   : > { %2245 = vadd.xlane.f32.xlu1 %v2244_v30 }
 0x6c2   : > { %v2246_v43 = vpop.xlane.xlu1 %2245 }
 0x6c3   : > { %v2247_v32 = vrot.slane %v2246_v43, 4 }
 0x6c5   : > { %v2248_v40 = vadd.f32 %v2247_v32, %v2246_v43 }
 0x6c7   : > { %v2249_v23 = vrot.slane %v2248_v40, 2 }
 0x6c9   : > { %v2250_v18 = vadd.f32 %v2249_v23, %v2248_v40 }
 0x6cb   : > { %v2251_v61 = vrot.slane %v2250_v18, 1 }
 0x6cd   : > { %v2252_v2 = vadd.f32 %v2251_v61, %v2250_v18 }
 0x6cf   : > { %2503 = vpush %v2252_v2 }
 0x700   : > { %s2504_s14 = spop %2503 }
 0x701   : > { %s2262_s15 = smul.f32 %s2504_s14, %s3233_s18 }
 0x703   : > { %v2263_v35 = vstv %s2262_s15 }
 0x704   : > { %2488 = vst.msk [vmem:[%s3239_s26 + $0x3] sm:$0x1] %vm1025_vm14, %v2263_v35 }
 0x705 PF: > { %p17_p8 = scmp.ge.s32.totalorder %s2804_s20, 4   ;;  %s3551_s15 = smov %s2744_s16 }
 0x706   : > { %s3552_s16 = smov %s2748_s17  ;;  %s3553_s17 = smov %s2814_s23 }
 0x707   : > { %s3554_s18 = smov %s2804_s20  ;;  %19 = sbr.rel (!%p17_p8) target bundleno = 5 (0x5), region = 97 }
 0x70c   :  { %2285 = vsyncpa [#allocation3], 1 }
 0x70d   :  { %2287 = vsyncpa [#allocation3 + $0x1], 1 }
 0x70e   :  { %2288 = vsyncpa [#allocation5], 1 }
 0x70f   :  { %2290 = vsyncpa [#allocation5 + $0x1], 1 }

</bundles_post_ra>
